<compile_context>
chip_gen: v5e
topology: v5e:2x2
jax: 0.10.0
libtpu: 0.0.40
codegen_flags: <defaults>
</compile_context>

<pallas_src>
import functools

import jax
import jax.numpy as jnp
from jax.experimental import pallas as pl
from jax.experimental.pallas import tpu as pltpu

EPS = 1e-6


# ------------------------------------------------------------------
# BlockSpec helpers
# ------------------------------------------------------------------
def _bcast_spec(shape):
    """Whole-array block, same block for every grid step (weights)."""
    nd = len(shape)
    return pl.BlockSpec(tuple(shape), lambda b, _nd=nd: (0,) * _nd)


def _batch_spec(shape_wo_batch):
    """One batch element per grid step; batch dim squeezed away in-kernel."""
    nd = len(shape_wo_batch)
    return pl.BlockSpec((pl.Squeezed(),) + tuple(shape_wo_batch),
                        lambda b, _nd=nd: (b,) + (0,) * _nd)


# ------------------------------------------------------------------
# Kernel 1: feature_abstract (nn.Linear, bias=False) -- one small matmul
# ------------------------------------------------------------------
def _matmul_kernel(x_ref, w_ref, o_ref):
    o_ref[...] = jnp.dot(x_ref[...], w_ref[...],
                         preferred_element_type=jnp.float32)


def feature_abstract(x, w):
    M, K = x.shape
    N = w.shape[1]
    return pl.pallas_call(
        _matmul_kernel,
        out_shape=jax.ShapeDtypeStruct((M, N), jnp.float32),
        grid=(1,),
        in_specs=[pl.BlockSpec((M, K), lambda i: (0, 0)),
                  pl.BlockSpec((K, N), lambda i: (0, 0))],
        out_specs=pl.BlockSpec((M, N), lambda i: (0, 0)),
    )(x, w)


# ------------------------------------------------------------------
# Kernel 2: fused decoder stack
#   grid = (B,): one batch element per step, everything resident in VMEM.
# ------------------------------------------------------------------
def _layer_norm(y, g, b):
    mu = jnp.mean(y, axis=-1, keepdims=True)
    var = jnp.mean(jnp.square(y - mu), axis=-1, keepdims=True)
    return (y - mu) * jax.lax.rsqrt(var + EPS) * g + b


def _decoder_stack_kernel(
        x0_ref, enc_ref, smask_ref, cmask_ref,
        ln0_g_ref, ln0_b_ref,
        s_wq_ref, s_wk_ref, s_wv_ref, s_fc_ref, s_lg_ref, s_lb_ref,
        c_wq_ref, c_wk_ref, c_wv_ref, c_fc_ref, c_lg_ref, c_lb_ref,
        f_w1_ref, f_b1_ref, f_w2_ref, f_b2_ref, f_lg_ref, f_lb_ref,
        o_ref,
        *, n_layers, n_head, d_k):
    inv_temp = 1.0 / (float(d_k) ** 0.5)

    def mha(xq, xkv, mask, wq_ref, wk_ref, wv_ref, fc_ref, lg_ref, lb_ref, l):
        # Per-head weight slabs; fc projection folded into the head loop so
        # nothing wider than d_model is ever materialized.
        d_model = fc_ref.shape[-1]
        out = jnp.zeros((xq.shape[0], d_model), jnp.float32)
        for h in range(n_head):
            q = jnp.dot(xq, wq_ref[l, h],
                        preferred_element_type=jnp.float32) * inv_temp
            k = jnp.dot(xkv, wk_ref[l, h], preferred_element_type=jnp.float32)
            v = jnp.dot(xkv, wv_ref[l, h], preferred_element_type=jnp.float32)
            s = jnp.einsum("qd,kd->qk", q, k,
                           preferred_element_type=jnp.float32)
            s = jnp.where(mask == 0.0, -1e9, s)   # masked_fill(mask == 0, -1e9)
            s = s - jnp.max(s, axis=-1, keepdims=True)
            p = jnp.exp(s)
            p = p * pl.reciprocal(jnp.sum(p, axis=-1, keepdims=True),
                                  approx=True)
            o_h = jnp.dot(p, v, preferred_element_type=jnp.float32)
            out = out + jnp.dot(o_h, fc_ref[l, h],
                                preferred_element_type=jnp.float32)
        # TODO(synk): nn.Dropout is identity in eval mode; not implemented.
        return _layer_norm(out + xq, lg_ref[l], lb_ref[l])

    x = x0_ref[...]           # (F, D)
    enc = enc_ref[...]        # (Ls, D)
    smask = smask_ref[...]    # (F, F)
    cmask = cmask_ref[...]    # (1, Ls) -> broadcasts over query rows

    x = _layer_norm(x, ln0_g_ref[...], ln0_b_ref[...])

    for l in range(n_layers):   # unrolled: static weight indices, no HBM trips
        x = mha(x, x, smask,
                s_wq_ref, s_wk_ref, s_wv_ref, s_fc_ref, s_lg_ref, s_lb_ref, l)
        x = mha(x, enc, cmask,
                c_wq_ref, c_wk_ref, c_wv_ref, c_fc_ref, c_lg_ref, c_lb_ref, l)
        h1 = jnp.dot(x, f_w1_ref[l], preferred_element_type=jnp.float32)
        h1 = jnp.maximum(h1 + f_b1_ref[l], 0.0)
        y = jnp.dot(h1, f_w2_ref[l], preferred_element_type=jnp.float32)
        y = y + f_b2_ref[l] + x
        x = _layer_norm(y, f_lg_ref[l], f_lb_ref[l])

    o_ref[...] = x


def decoder_stack(x0, enc_output, slf_mask, src_mask, pk):
    B, F, D = x0.shape
    Ls = enc_output.shape[1]
    n_layers, n_head, _, d_k = pk["s_wq"].shape

    weight_order = ("ln0_g", "ln0_b",
                    "s_wq", "s_wk", "s_wv", "s_fc", "s_lg", "s_lb",
                    "c_wq", "c_wk", "c_wv", "c_fc", "c_lg", "c_lb",
                    "f_w1", "f_b1", "f_w2", "f_b2", "f_lg", "f_lb")
    weights = [pk[name] for name in weight_order]

    kernel = functools.partial(_decoder_stack_kernel,
                               n_layers=n_layers, n_head=n_head, d_k=d_k)

    return pl.pallas_call(
        kernel,
        out_shape=jax.ShapeDtypeStruct((B, F, D), jnp.float32),
        grid=(B,),
        in_specs=[_batch_spec((F, D)),     # x0
                  _batch_spec((Ls, D)),    # enc_output
                  _batch_spec((F, F)),     # self-attn mask
                  _batch_spec((1, Ls))]    # cross-attn mask
                 + [_bcast_spec(w.shape) for w in weights],
        out_specs=_batch_spec((F, D)),
        compiler_params=pltpu.CompilerParams(
            dimension_semantics=("parallel",)),   # v7x: split batch over 2 TCs
    )(x0, enc_output, slf_mask, src_mask, *weights)


# ------------------------------------------------------------------
# Forward wrapper (glue only: one reshape between the two pallas_calls)
# ------------------------------------------------------------------
def decoder_forward(packed, trg_seq, trg_mask, enc_output, src_mask):
    B = trg_seq.shape[0]
    d_model = packed["ln0_g"].shape[-1]

    # feature_abstract: (B, num_inputs) @ W -> (B, d_model * num_feature)
    x0 = feature_abstract(trg_seq, packed["feature_abstract"])
    num_feature = x0.shape[1] // d_model
    x0 = x0.reshape(B, num_feature, d_model)   # .view(-1, num_feature, d_model)
    # TODO(synk): Decoder.dropout is identity in eval mode; not implemented.

    return decoder_stack(x0, enc_output,
                         trg_mask.astype(jnp.float32),
                         src_mask.astype(jnp.float32),
                         packed)


# ------------------------------------------------------------------
# Parameter init (PyTorch layout: Linear weights stored as (in, out) = W^T)
# and one-time packing into the kernel-friendly stacked layout.
# ------------------------------------------------------------------
def init_params(key, *, num_inputs, num_feature, n_layers, n_head,
                d_k, d_v, d_model, d_inner):
    def nxt():
        nonlocal key
        key, sub = jax.random.split(key)
        return sub

    def w(shape, scale=0.05):
        return (scale * jax.random.normal(nxt(), shape)).astype(jnp.float32)

    def mha_params():
        return {
            "w_qs": w((d_model, n_head * d_k)),
            "w_ks": w((d_model, n_head * d_k)),
            "w_vs": w((d_model, n_head * d_v)),
            "fc":   w((n_head * d_v, d_model)),
            "ln_g": jnp.ones((d_model,), jnp.float32),
            "ln_b": jnp.zeros((d_model,), jnp.float32),
        }

    params = {
        "feature_abstract": w((num_inputs, d_model * num_feature)),
        "ln_g": jnp.ones((d_model,), jnp.float32),
        "ln_b": jnp.zeros((d_model,), jnp.float32),
        "layers": [],
    }
    for _ in range(n_layers):
        params["layers"].append({
            "slf": mha_params(),
            "enc": mha_params(),
            "ffn_w1": w((d_model, d_inner)),
            "ffn_b1": w((d_inner,), 0.01),
            "ffn_w2": w((d_inner, d_model)),
            "ffn_b2": w((d_model,), 0.01),
            "ffn_ln_g": jnp.ones((d_model,), jnp.float32),
            "ffn_ln_b": jnp.zeros((d_model,), jnp.float32),
        })
    return params


def pack_params(params, *, n_head, d_k, d_v):
    """Stack per-layer weights and split projection weights per head."""
    d_model = params["ln_g"].shape[0]
    layers = params["layers"]

    def per_head_in(wmat, dh):     # (D, H*dh) -> (H, D, dh)
        return wmat.reshape(d_model, n_head, dh).transpose(1, 0, 2)

    def per_head_out(wmat, dh):    # (H*dh, D) -> (H, dh, D)
        return wmat.reshape(n_head, dh, d_model)

    def stack(fn):
        return jnp.stack([fn(layer) for layer in layers], axis=0)

    return {
        "feature_abstract": params["feature_abstract"],
        "ln0_g": params["ln_g"].reshape(1, d_model),
        "ln0_b": params["ln_b"].reshape(1, d_model),
        "s_wq": stack(lambda l: per_head_in(l["slf"]["w_qs"], d_k)),
        "s_wk": stack(lambda l: per_head_in(l["slf"]["w_ks"], d_k)),
        "s_wv": stack(lambda l: per_head_in(l["slf"]["w_vs"], d_v)),
        "s_fc": stack(lambda l: per_head_out(l["slf"]["fc"], d_v)),
        "s_lg": stack(lambda l: l["slf"]["ln_g"].reshape(1, d_model)),
        "s_lb": stack(lambda l: l["slf"]["ln_b"].reshape(1, d_model)),
        "c_wq": stack(lambda l: per_head_in(l["enc"]["w_qs"], d_k)),
        "c_wk": stack(lambda l: per_head_in(l["enc"]["w_ks"], d_k)),
        "c_wv": stack(lambda l: per_head_in(l["enc"]["w_vs"], d_v)),
        "c_fc": stack(lambda l: per_head_out(l["enc"]["fc"], d_v)),
        "c_lg": stack(lambda l: l["enc"]["ln_g"].reshape(1, d_model)),
        "c_lb": stack(lambda l: l["enc"]["ln_b"].reshape(1, d_model)),
        "f_w1": stack(lambda l: l["ffn_w1"]),
        "f_b1": stack(lambda l: l["ffn_b1"].reshape(1, -1)),
        "f_w2": stack(lambda l: l["ffn_w2"]),
        "f_b2": stack(lambda l: l["ffn_b2"].reshape(1, -1)),
        "f_lg": stack(lambda l: l["ffn_ln_g"].reshape(1, -1)),
        "f_lb": stack(lambda l: l["ffn_ln_b"].reshape(1, -1)),
    }


if __name__ == "__main__":
    # Small, decoder-consistent shapes.
    B = 2
    num_inputs = 8
    num_feature = 8       # target sequence length after feature_abstract view
    d_model = 32
    n_head = 2
    d_k = d_v = 16
    d_inner = 64
    n_layers = 2
    len_src = 8

    key = jax.random.PRNGKey(0)
    k_par, k_trg, k_enc = jax.random.split(key, 3)

    params = init_params(k_par, num_inputs=num_inputs, num_feature=num_feature,
                         n_layers=n_layers, n_head=n_head, d_k=d_k, d_v=d_v,
                         d_model=d_model, d_inner=d_inner)
    packed = pack_params(params, n_head=n_head, d_k=d_k, d_v=d_v)

    trg_seq = jax.random.normal(k_trg, (B, num_inputs), jnp.float32)
    enc_output = jax.random.normal(k_enc, (B, len_src, d_model), jnp.float32)
    # causal self-attention mask (B, Lq, Lq); full source mask (B, 1, Lsrc)
    trg_mask = jnp.broadcast_to(
        jnp.tril(jnp.ones((num_feature, num_feature), jnp.float32)),
        (B, num_feature, num_feature))
    src_mask = jnp.ones((B, 1, len_src), jnp.float32)

    fwd = jax.jit(decoder_forward)
    out = fwd(packed, trg_seq, trg_mask, enc_output, src_mask)
    out = jax.block_until_ready(out)
    assert out.shape == (B, num_feature, d_model)
    assert bool(jnp.all(jnp.isfinite(out)))
    print("KERNEL_OK")
</pallas_src>

<mosaic_0001>
module attributes {stable_mosaic.version = 11 : i64} {
  func.func @_matmul_kernel(%arg0: i32, %arg1: memref<2x8xf32, #tpu.memory_space<vmem>>, %arg2: memref<8x256xf32, #tpu.memory_space<vmem>>, %arg3: memref<2x256xf32, #tpu.memory_space<vmem>>) attributes {dimension_semantics = [#tpu.dimension_semantics<arbitrary>], iteration_bounds = array<i64: 1>, scalar_prefetch = 0 : i64, scratch_operands = 0 : i64, tpu.core_type = #tpu.core_type<tc>, window_params = [{pipeline_mode = #tpu.pipeline_mode<synchronous>, transform_indices = @transform_0, window_bounds = array<i64: 2, 8>}, {pipeline_mode = #tpu.pipeline_mode<synchronous>, transform_indices = @transform_1, window_bounds = array<i64: 8, 256>}, {pipeline_mode = #tpu.pipeline_mode<synchronous>, transform_indices = @transform_2, window_bounds = array<i64: 2, 256>}]} {
    %c0 = arith.constant 0 : index
    %c0_0 = arith.constant 0 : index
    %0 = vector.load %arg1[%c0, %c0_0] : memref<2x8xf32, #tpu.memory_space<vmem>>, vector<2x8xf32>
    %c0_1 = arith.constant 0 : index
    %c0_2 = arith.constant 0 : index
    %1 = vector.load %arg2[%c0_1, %c0_2] : memref<8x256xf32, #tpu.memory_space<vmem>>, vector<8x256xf32>
    %cst = arith.constant dense<0.000000e+00> : vector<2x256xf32>
    %2 = tpu.matmul %0, %1, %cst {dimension_numbers = #tpu.dot_dimension_numbers<[1], [0], [0], [1], [0, 0, 1, 1], [], []>} : vector<2x8xf32>, vector<8x256xf32>, vector<2x256xf32> -> vector<2x256xf32>
    %c0_3 = arith.constant 0 : index
    %c0_4 = arith.constant 0 : index
    %3 = vector.load %arg3[%c0_3, %c0_4] : memref<2x256xf32, #tpu.memory_space<vmem>>, vector<2x256xf32>
    tpu.vector_store %arg3[%c0_3, %c0_4], %2 {strides = array<i32>} : memref<2x256xf32, #tpu.memory_space<vmem>>, vector<2x256xf32>,
    return
  }
  func.func @transform_0(%arg0: i32) -> (i32, i32) {
    %c0_i32 = arith.constant 0 : i32
    %c0_i32_0 = arith.constant 0 : i32
    %c0_i32_1 = arith.constant 0 : i32
    return %c0_i32, %c0_i32_0 : i32, i32
  }
  func.func @transform_1(%arg0: i32) -> (i32, i32) {
    %c0_i32 = arith.constant 0 : i32
    %c0_i32_0 = arith.constant 0 : i32
    %c0_i32_1 = arith.constant 0 : i32
    return %c0_i32, %c0_i32_0 : i32, i32
  }
  func.func @transform_2(%arg0: i32) -> (i32, i32) {
    %c0_i32 = arith.constant 0 : i32
    %c0_i32_0 = arith.constant 0 : i32
    %c0_i32_1 = arith.constant 0 : i32
    return %c0_i32, %c0_i32_0 : i32, i32
  }
}

module attributes {stable_mosaic.version = 11 : i64} {
  func.func @_decoder_stack_kernel(%arg0: i32, %arg1: memref<1x8x32xf32, #tpu.memory_space<vmem>>, %arg2: memref<1x8x32xf32, #tpu.memory_space<vmem>>, %arg3: memref<1x8x8xf32, #tpu.memory_space<vmem>>, %arg4: memref<1x1x8xf32, #tpu.memory_space<vmem>>, %arg5: memref<1x32xf32, #tpu.memory_space<vmem>>, %arg6: memref<1x32xf32, #tpu.memory_space<vmem>>, %arg7: memref<2x2x32x16xf32, #tpu.memory_space<vmem>>, %arg8: memref<2x2x32x16xf32, #tpu.memory_space<vmem>>, %arg9: memref<2x2x32x16xf32, #tpu.memory_space<vmem>>, %arg10: memref<2x2x16x32xf32, #tpu.memory_space<vmem>>, %arg11: memref<2x1x32xf32, #tpu.memory_space<vmem>>, %arg12: memref<2x1x32xf32, #tpu.memory_space<vmem>>, %arg13: memref<2x2x32x16xf32, #tpu.memory_space<vmem>>, %arg14: memref<2x2x32x16xf32, #tpu.memory_space<vmem>>, %arg15: memref<2x2x32x16xf32, #tpu.memory_space<vmem>>, %arg16: memref<2x2x16x32xf32, #tpu.memory_space<vmem>>, %arg17: memref<2x1x32xf32, #tpu.memory_space<vmem>>, %arg18: memref<2x1x32xf32, #tpu.memory_space<vmem>>, %arg19: memref<2x32x64xf32, #tpu.memory_space<vmem>>, %arg20: memref<2x1x64xf32, #tpu.memory_space<vmem>>, %arg21: memref<2x64x32xf32, #tpu.memory_space<vmem>>, %arg22: memref<2x1x32xf32, #tpu.memory_space<vmem>>, %arg23: memref<2x1x32xf32, #tpu.memory_space<vmem>>, %arg24: memref<2x1x32xf32, #tpu.memory_space<vmem>>, %arg25: memref<1x8x32xf32, #tpu.memory_space<vmem>>) attributes {dimension_semantics = [#tpu.dimension_semantics<parallel>], iteration_bounds = array<i64: 2>, scalar_prefetch = 0 : i64, scratch_operands = 0 : i64, tpu.core_type = #tpu.core_type<tc>, window_params = [{transform_indices = @transform_0, window_bounds = array<i64: 1, 8, 32>}, {transform_indices = @transform_1, window_bounds = array<i64: 1, 8, 32>}, {transform_indices = @transform_2, window_bounds = array<i64: 1, 8, 8>}, {transform_indices = @transform_3, window_bounds = array<i64: 1, 1, 8>}, {pipeline_mode = #tpu.pipeline_mode<synchronous>, transform_indices = @transform_4, window_bounds = array<i64: 1, 32>}, {pipeline_mode = #tpu.pipeline_mode<synchronous>, transform_indices = @transform_5, window_bounds = array<i64: 1, 32>}, {pipeline_mode = #tpu.pipeline_mode<synchronous>, transform_indices = @transform_6, window_bounds = array<i64: 2, 2, 32, 16>}, {pipeline_mode = #tpu.pipeline_mode<synchronous>, transform_indices = @transform_7, window_bounds = array<i64: 2, 2, 32, 16>}, {pipeline_mode = #tpu.pipeline_mode<synchronous>, transform_indices = @transform_8, window_bounds = array<i64: 2, 2, 32, 16>}, {pipeline_mode = #tpu.pipeline_mode<synchronous>, transform_indices = @transform_9, window_bounds = array<i64: 2, 2, 16, 32>}, {pipeline_mode = #tpu.pipeline_mode<synchronous>, transform_indices = @transform_10, window_bounds = array<i64: 2, 1, 32>}, {pipeline_mode = #tpu.pipeline_mode<synchronous>, transform_indices = @transform_11, window_bounds = array<i64: 2, 1, 32>}, {pipeline_mode = #tpu.pipeline_mode<synchronous>, transform_indices = @transform_12, window_bounds = array<i64: 2, 2, 32, 16>}, {pipeline_mode = #tpu.pipeline_mode<synchronous>, transform_indices = @transform_13, window_bounds = array<i64: 2, 2, 32, 16>}, {pipeline_mode = #tpu.pipeline_mode<synchronous>, transform_indices = @transform_14, window_bounds = array<i64: 2, 2, 32, 16>}, {pipeline_mode = #tpu.pipeline_mode<synchronous>, transform_indices = @transform_15, window_bounds = array<i64: 2, 2, 16, 32>}, {pipeline_mode = #tpu.pipeline_mode<synchronous>, transform_indices = @transform_16, window_bounds = array<i64: 2, 1, 32>}, {pipeline_mode = #tpu.pipeline_mode<synchronous>, transform_indices = @transform_17, window_bounds = array<i64: 2, 1, 32>}, {pipeline_mode = #tpu.pipeline_mode<synchronous>, transform_indices = @transform_18, window_bounds = array<i64: 2, 32, 64>}, {pipeline_mode = #tpu.pipeline_mode<synchronous>, transform_indices = @transform_19, window_bounds = array<i64: 2, 1, 64>}, {pipeline_mode = #tpu.pipeline_mode<synchronous>, transform_indices = @transform_20, window_bounds = array<i64: 2, 64, 32>}, {pipeline_mode = #tpu.pipeline_mode<synchronous>, transform_indices = @transform_21, window_bounds = array<i64: 2, 1, 32>}, {pipeline_mode = #tpu.pipeline_mode<synchronous>, transform_indices = @transform_22, window_bounds = array<i64: 2, 1, 32>}, {pipeline_mode = #tpu.pipeline_mode<synchronous>, transform_indices = @transform_23, window_bounds = array<i64: 2, 1, 32>}, {transform_indices = @transform_24, window_bounds = array<i64: 1, 8, 32>}]} {
    %c0 = arith.constant 0 : index
    %c0_0 = arith.constant 0 : index
    %c0_1 = arith.constant 0 : index
    %0 = vector.load %arg1[%c0, %c0_0, %c0_1] : memref<1x8x32xf32, #tpu.memory_space<vmem>>, vector<1x8x32xf32>
    %1 = vector.shape_cast %0 : vector<1x8x32xf32> to vector<8x32xf32>
    %c0_2 = arith.constant 0 : index
    %c0_3 = arith.constant 0 : index
    %c0_4 = arith.constant 0 : index
    %2 = vector.load %arg2[%c0_2, %c0_3, %c0_4] : memref<1x8x32xf32, #tpu.memory_space<vmem>>, vector<1x8x32xf32>
    %3 = vector.shape_cast %2 : vector<1x8x32xf32> to vector<8x32xf32>
    %c0_5 = arith.constant 0 : index
    %c0_6 = arith.constant 0 : index
    %c0_7 = arith.constant 0 : index
    %4 = vector.load %arg3[%c0_5, %c0_6, %c0_7] : memref<1x8x8xf32, #tpu.memory_space<vmem>>, vector<1x8x8xf32>
    %5 = vector.shape_cast %4 : vector<1x8x8xf32> to vector<8x8xf32>
    %c0_8 = arith.constant 0 : index
    %c0_9 = arith.constant 0 : index
    %c0_10 = arith.constant 0 : index
    %6 = vector.load %arg4[%c0_8, %c0_9, %c0_10] : memref<1x1x8xf32, #tpu.memory_space<vmem>>, vector<1x1x8xf32>
    %7 = vector.shape_cast %6 : vector<1x1x8xf32> to vector<1x8xf32>
    %c0_11 = arith.constant 0 : index
    %c0_12 = arith.constant 0 : index
    %8 = vector.load %arg5[%c0_11, %c0_12] : memref<1x32xf32, #tpu.memory_space<vmem>>, vector<1x32xf32>
    %c0_13 = arith.constant 0 : index
    %c0_14 = arith.constant 0 : index
    %9 = vector.load %arg6[%c0_13, %c0_14] : memref<1x32xf32, #tpu.memory_space<vmem>>, vector<1x32xf32>
    %cst = arith.constant dense<0.000000e+00> : vector<8xf32>
    %10 = vector.multi_reduction <add>, %1, %cst [1] : vector<8x32xf32> to vector<8xf32>
    %11 = vector.shape_cast %10 : vector<8xf32> to vector<8x1xf32>
    %cst_15 = arith.constant 3.200000e+01 : f32
    %12 = vector.broadcast %cst_15 : f32 to vector<8x1xf32>
    %13 = arith.divf %11, %12 : vector<8x1xf32>
    %14 = vector.broadcast %13 : vector<8x1xf32> to vector<8x32xf32>
    %15 = arith.subf %1, %14 : vector<8x32xf32>
    %16 = arith.mulf %15, %15 : vector<8x32xf32>
    %cst_16 = arith.constant dense<0.000000e+00> : vector<8xf32>
    %17 = vector.multi_reduction <add>, %16, %cst_16 [1] : vector<8x32xf32> to vector<8xf32>
    %18 = vector.shape_cast %17 : vector<8xf32> to vector<8x1xf32>
    %cst_17 = arith.constant 3.200000e+01 : f32
    %19 = vector.broadcast %cst_17 : f32 to vector<8x1xf32>
    %20 = arith.divf %18, %19 : vector<8x1xf32>
    %21 = vector.broadcast %13 : vector<8x1xf32> to vector<8x32xf32>
    %22 = arith.subf %1, %21 : vector<8x32xf32>
    %cst_18 = arith.constant 9.99999997E-7 : f32
    %23 = vector.broadcast %cst_18 : f32 to vector<8x1xf32>
    %24 = arith.addf %20, %23 : vector<8x1xf32>
    %25 = math.rsqrt %24 : vector<8x1xf32>
    %26 = vector.broadcast %25 : vector<8x1xf32> to vector<8x32xf32>
    %27 = arith.mulf %22, %26 : vector<8x32xf32>
    %28 = vector.broadcast %8 : vector<1x32xf32> to vector<8x32xf32>
    %29 = arith.mulf %27, %28 : vector<8x32xf32>
    %30 = vector.broadcast %9 : vector<1x32xf32> to vector<8x32xf32>
    %31 = arith.addf %29, %30 : vector<8x32xf32>
    %cst_19 = arith.constant 0.000000e+00 : f32
    %32 = vector.broadcast %cst_19 : f32 to vector<8x32xf32>
    %c0_20 = arith.constant 0 : index
    %c0_21 = arith.constant 0 : index
    %c0_22 = arith.constant 0 : index
    %c0_23 = arith.constant 0 : index
    %33 = vector.load %arg7[%c0_20, %c0_21, %c0_22, %c0_23] : memref<2x2x32x16xf32, #tpu.memory_space<vmem>>, vector<1x1x32x16xf32>
    %34 = vector.shape_cast %33 : vector<1x1x32x16xf32> to vector<32x16xf32>
    %cst_24 = arith.constant dense<0.000000e+00> : vector<8x16xf32>
    %35 = tpu.matmul %31, %34, %cst_24 {dimension_numbers = #tpu.dot_dimension_numbers<[1], [0], [0], [1], [0, 0, 1, 1], [], []>} : vector<8x32xf32>, vector<32x16xf32>, vector<8x16xf32> -> vector<8x16xf32>
    %cst_25 = arith.constant 2.500000e-01 : f32
    %36 = vector.broadcast %cst_25 : f32 to vector<8x16xf32>
    %37 = arith.mulf %35, %36 : vector<8x16xf32>
    %c0_26 = arith.constant 0 : index
    %c0_27 = arith.constant 0 : index
    %c0_28 = arith.constant 0 : index
    %c0_29 = arith.constant 0 : index
    %38 = vector.load %arg8[%c0_26, %c0_27, %c0_28, %c0_29] : memref<2x2x32x16xf32, #tpu.memory_space<vmem>>, vector<1x1x32x16xf32>
    %39 = vector.shape_cast %38 : vector<1x1x32x16xf32> to vector<32x16xf32>
    %cst_30 = arith.constant dense<0.000000e+00> : vector<8x16xf32>
    %40 = tpu.matmul %31, %39, %cst_30 {dimension_numbers = #tpu.dot_dimension_numbers<[1], [0], [0], [1], [0, 0, 1, 1], [], []>} : vector<8x32xf32>, vector<32x16xf32>, vector<8x16xf32> -> vector<8x16xf32>
    %c0_31 = arith.constant 0 : index
    %c0_32 = arith.constant 0 : index
    %c0_33 = arith.constant 0 : index
    %c0_34 = arith.constant 0 : index
    %41 = vector.load %arg9[%c0_31, %c0_32, %c0_33, %c0_34] : memref<2x2x32x16xf32, #tpu.memory_space<vmem>>, vector<1x1x32x16xf32>
    %42 = vector.shape_cast %41 : vector<1x1x32x16xf32> to vector<32x16xf32>
    %cst_35 = arith.constant dense<0.000000e+00> : vector<8x16xf32>
    %43 = tpu.matmul %31, %42, %cst_35 {dimension_numbers = #tpu.dot_dimension_numbers<[1], [0], [0], [1], [0, 0, 1, 1], [], []>} : vector<8x32xf32>, vector<32x16xf32>, vector<8x16xf32> -> vector<8x16xf32>
    "tpu.trace_start"() <{level = 10 : i32, message = "qd,kd->qk"}> : () -> ()
    %cst_36 = arith.constant dense<0.000000e+00> : vector<8x8xf32>
    %44 = tpu.matmul %37, %40, %cst_36 {dimension_numbers = #tpu.dot_dimension_numbers<[1], [1], [0], [0], [0, 0, 1, 0], [], []>} : vector<8x16xf32>, vector<8x16xf32>, vector<8x8xf32> -> vector<8x8xf32>
    %cst_37 = arith.constant 0.000000e+00 : f32
    "tpu.trace_stop"() : () -> ()
    %45 = vector.broadcast %cst_37 : f32 to vector<8x8xf32>
    %46 = arith.cmpf oeq, %5, %45 : vector<8x8xf32>
    %cst_38 = arith.constant -1.000000e+09 : f32
    %47 = vector.broadcast %cst_38 : f32 to vector<8x8xf32>
    %48 = arith.select %46, %47, %44 : vector<8x8xi1>, vector<8x8xf32>
    %cst_39 = arith.constant dense<0xFF800000> : vector<8xf32>
    %49 = vector.multi_reduction <maximumf>, %48, %cst_39 [1] : vector<8x8xf32> to vector<8xf32>
    %50 = vector.shape_cast %49 : vector<8xf32> to vector<8x1xf32>
    %51 = vector.broadcast %50 : vector<8x1xf32> to vector<8x8xf32>
    %52 = arith.subf %48, %51 : vector<8x8xf32>
    %53 = math.exp %52 : vector<8x8xf32>
    %cst_40 = arith.constant dense<0.000000e+00> : vector<8xf32>
    %54 = vector.multi_reduction <add>, %53, %cst_40 [1] : vector<8x8xf32> to vector<8xf32>
    %55 = vector.shape_cast %54 : vector<8xf32> to vector<8x1xf32>
    %56 = tpu.reciprocal %55 {approx = true} : vector<8x1xf32> -> vector<8x1xf32>
    %57 = vector.broadcast %56 : vector<8x1xf32> to vector<8x8xf32>
    %58 = arith.mulf %53, %57 : vector<8x8xf32>
    %cst_41 = arith.constant dense<0.000000e+00> : vector<8x16xf32>
    %59 = tpu.matmul %58, %43, %cst_41 {dimension_numbers = #tpu.dot_dimension_numbers<[1], [0], [0], [1], [0, 0, 1, 1], [], []>} : vector<8x8xf32>, vector<8x16xf32>, vector<8x16xf32> -> vector<8x16xf32>
    %c0_42 = arith.constant 0 : index
    %c0_43 = arith.constant 0 : index
    %c0_44 = arith.constant 0 : index
    %c0_45 = arith.constant 0 : index
    %60 = vector.load %arg10[%c0_42, %c0_43, %c0_44, %c0_45] : memref<2x2x16x32xf32, #tpu.memory_space<vmem>>, vector<1x1x16x32xf32>
    %61 = vector.shape_cast %60 : vector<1x1x16x32xf32> to vector<16x32xf32>
    %cst_46 = arith.constant dense<0.000000e+00> : vector<8x32xf32>
    %62 = tpu.matmul %59, %61, %cst_46 {dimension_numbers = #tpu.dot_dimension_numbers<[1], [0], [0], [1], [0, 0, 1, 1], [], []>} : vector<8x16xf32>, vector<16x32xf32>, vector<8x32xf32> -> vector<8x32xf32>
    %63 = arith.addf %32, %62 : vector<8x32xf32>
    %c0_47 = arith.constant 0 : index
    %c1 = arith.constant 1 : index
    %c0_48 = arith.constant 0 : index
    %c0_49 = arith.constant 0 : index
    %64 = vector.load %arg7[%c0_47, %c1, %c0_48, %c0_49] : memref<2x2x32x16xf32, #tpu.memory_space<vmem>>, vector<1x1x32x16xf32>
    %65 = vector.shape_cast %64 : vector<1x1x32x16xf32> to vector<32x16xf32>
    %cst_50 = arith.constant dense<0.000000e+00> : vector<8x16xf32>
    %66 = tpu.matmul %31, %65, %cst_50 {dimension_numbers = #tpu.dot_dimension_numbers<[1], [0], [0], [1], [0, 0, 1, 1], [], []>} : vector<8x32xf32>, vector<32x16xf32>, vector<8x16xf32> -> vector<8x16xf32>
    %cst_51 = arith.constant 2.500000e-01 : f32
    %67 = vector.broadcast %cst_51 : f32 to vector<8x16xf32>
    %68 = arith.mulf %66, %67 : vector<8x16xf32>
    %c0_52 = arith.constant 0 : index
    %c1_53 = arith.constant 1 : index
    %c0_54 = arith.constant 0 : index
    %c0_55 = arith.constant 0 : index
    %69 = vector.load %arg8[%c0_52, %c1_53, %c0_54, %c0_55] : memref<2x2x32x16xf32, #tpu.memory_space<vmem>>, vector<1x1x32x16xf32>
    %70 = vector.shape_cast %69 : vector<1x1x32x16xf32> to vector<32x16xf32>
    %cst_56 = arith.constant dense<0.000000e+00> : vector<8x16xf32>
    %71 = tpu.matmul %31, %70, %cst_56 {dimension_numbers = #tpu.dot_dimension_numbers<[1], [0], [0], [1], [0, 0, 1, 1], [], []>} : vector<8x32xf32>, vector<32x16xf32>, vector<8x16xf32> -> vector<8x16xf32>
    %c0_57 = arith.constant 0 : index
    %c1_58 = arith.constant 1 : index
    %c0_59 = arith.constant 0 : index
    %c0_60 = arith.constant 0 : index
    %72 = vector.load %arg9[%c0_57, %c1_58, %c0_59, %c0_60] : memref<2x2x32x16xf32, #tpu.memory_space<vmem>>, vector<1x1x32x16xf32>
    %73 = vector.shape_cast %72 : vector<1x1x32x16xf32> to vector<32x16xf32>
    %cst_61 = arith.constant dense<0.000000e+00> : vector<8x16xf32>
    %74 = tpu.matmul %31, %73, %cst_61 {dimension_numbers = #tpu.dot_dimension_numbers<[1], [0], [0], [1], [0, 0, 1, 1], [], []>} : vector<8x32xf32>, vector<32x16xf32>, vector<8x16xf32> -> vector<8x16xf32>
    "tpu.trace_start"() <{level = 10 : i32, message = "qd,kd->qk"}> : () -> ()
    %cst_62 = arith.constant dense<0.000000e+00> : vector<8x8xf32>
    %75 = tpu.matmul %68, %71, %cst_62 {dimension_numbers = #tpu.dot_dimension_numbers<[1], [1], [0], [0], [0, 0, 1, 0], [], []>} : vector<8x16xf32>, vector<8x16xf32>, vector<8x8xf32> -> vector<8x8xf32>
    %cst_63 = arith.constant 0.000000e+00 : f32
    "tpu.trace_stop"() : () -> ()
    %76 = vector.broadcast %cst_63 : f32 to vector<8x8xf32>
    %77 = arith.cmpf oeq, %5, %76 : vector<8x8xf32>
    %cst_64 = arith.constant -1.000000e+09 : f32
    %78 = vector.broadcast %cst_64 : f32 to vector<8x8xf32>
    %79 = arith.select %77, %78, %75 : vector<8x8xi1>, vector<8x8xf32>
    %cst_65 = arith.constant dense<0xFF800000> : vector<8xf32>
    %80 = vector.multi_reduction <maximumf>, %79, %cst_65 [1] : vector<8x8xf32> to vector<8xf32>
    %81 = vector.shape_cast %80 : vector<8xf32> to vector<8x1xf32>
    %82 = vector.broadcast %81 : vector<8x1xf32> to vector<8x8xf32>
    %83 = arith.subf %79, %82 : vector<8x8xf32>
    %84 = math.exp %83 : vector<8x8xf32>
    %cst_66 = arith.constant dense<0.000000e+00> : vector<8xf32>
    %85 = vector.multi_reduction <add>, %84, %cst_66 [1] : vector<8x8xf32> to vector<8xf32>
    %86 = vector.shape_cast %85 : vector<8xf32> to vector<8x1xf32>
    %87 = tpu.reciprocal %86 {approx = true} : vector<8x1xf32> -> vector<8x1xf32>
    %88 = vector.broadcast %87 : vector<8x1xf32> to vector<8x8xf32>
    %89 = arith.mulf %84, %88 : vector<8x8xf32>
    %cst_67 = arith.constant dense<0.000000e+00> : vector<8x16xf32>
    %90 = tpu.matmul %89, %74, %cst_67 {dimension_numbers = #tpu.dot_dimension_numbers<[1], [0], [0], [1], [0, 0, 1, 1], [], []>} : vector<8x8xf32>, vector<8x16xf32>, vector<8x16xf32> -> vector<8x16xf32>
    %c0_68 = arith.constant 0 : index
    %c1_69 = arith.constant 1 : index
    %c0_70 = arith.constant 0 : index
    %c0_71 = arith.constant 0 : index
    %91 = vector.load %arg10[%c0_68, %c1_69, %c0_70, %c0_71] : memref<2x2x16x32xf32, #tpu.memory_space<vmem>>, vector<1x1x16x32xf32>
    %92 = vector.shape_cast %91 : vector<1x1x16x32xf32> to vector<16x32xf32>
    %cst_72 = arith.constant dense<0.000000e+00> : vector<8x32xf32>
    %93 = tpu.matmul %90, %92, %cst_72 {dimension_numbers = #tpu.dot_dimension_numbers<[1], [0], [0], [1], [0, 0, 1, 1], [], []>} : vector<8x16xf32>, vector<16x32xf32>, vector<8x32xf32> -> vector<8x32xf32>
    %94 = arith.addf %63, %93 : vector<8x32xf32>
    %95 = arith.addf %94, %31 : vector<8x32xf32>
    %c0_73 = arith.constant 0 : index
    %c0_74 = arith.constant 0 : index
    %c0_75 = arith.constant 0 : index
    %96 = vector.load %arg11[%c0_73, %c0_74, %c0_75] : memref<2x1x32xf32, #tpu.memory_space<vmem>>, vector<1x1x32xf32>
    %97 = vector.shape_cast %96 : vector<1x1x32xf32> to vector<1x32xf32>
    %c0_76 = arith.constant 0 : index
    %c0_77 = arith.constant 0 : index
    %c0_78 = arith.constant 0 : index
    %98 = vector.load %arg12[%c0_76, %c0_77, %c0_78] : memref<2x1x32xf32, #tpu.memory_space<vmem>>, vector<1x1x32xf32>
    %99 = vector.shape_cast %98 : vector<1x1x32xf32> to vector<1x32xf32>
    %cst_79 = arith.constant dense<0.000000e+00> : vector<8xf32>
    %100 = vector.multi_reduction <add>, %95, %cst_79 [1] : vector<8x32xf32> to vector<8xf32>
    %101 = vector.shape_cast %100 : vector<8xf32> to vector<8x1xf32>
    %cst_80 = arith.constant 3.200000e+01 : f32
    %102 = vector.broadcast %cst_80 : f32 to vector<8x1xf32>
    %103 = arith.divf %101, %102 : vector<8x1xf32>
    %104 = vector.broadcast %103 : vector<8x1xf32> to vector<8x32xf32>
    %105 = arith.subf %95, %104 : vector<8x32xf32>
    %106 = arith.mulf %105, %105 : vector<8x32xf32>
    %cst_81 = arith.constant dense<0.000000e+00> : vector<8xf32>
    %107 = vector.multi_reduction <add>, %106, %cst_81 [1] : vector<8x32xf32> to vector<8xf32>
    %108 = vector.shape_cast %107 : vector<8xf32> to vector<8x1xf32>
    %cst_82 = arith.constant 3.200000e+01 : f32
    %109 = vector.broadcast %cst_82 : f32 to vector<8x1xf32>
    %110 = arith.divf %108, %109 : vector<8x1xf32>
    %111 = vector.broadcast %103 : vector<8x1xf32> to vector<8x32xf32>
    %112 = arith.subf %95, %111 : vector<8x32xf32>
    %cst_83 = arith.constant 9.99999997E-7 : f32
    %113 = vector.broadcast %cst_83 : f32 to vector<8x1xf32>
    %114 = arith.addf %110, %113 : vector<8x1xf32>
    %115 = math.rsqrt %114 : vector<8x1xf32>
    %116 = vector.broadcast %115 : vector<8x1xf32> to vector<8x32xf32>
    %117 = arith.mulf %112, %116 : vector<8x32xf32>
    %118 = vector.broadcast %97 : vector<1x32xf32> to vector<8x32xf32>
    %119 = arith.mulf %117, %118 : vector<8x32xf32>
    %120 = vector.broadcast %99 : vector<1x32xf32> to vector<8x32xf32>
    %121 = arith.addf %119, %120 : vector<8x32xf32>
    %cst_84 = arith.constant 0.000000e+00 : f32
    %122 = vector.broadcast %cst_84 : f32 to vector<8x32xf32>
    %c0_85 = arith.constant 0 : index
    %c0_86 = arith.constant 0 : index
    %c0_87 = arith.constant 0 : index
    %c0_88 = arith.constant 0 : index
    %123 = vector.load %arg13[%c0_85, %c0_86, %c0_87, %c0_88] : memref<2x2x32x16xf32, #tpu.memory_space<vmem>>, vector<1x1x32x16xf32>
    %124 = vector.shape_cast %123 : vector<1x1x32x16xf32> to vector<32x16xf32>
    %cst_89 = arith.constant dense<0.000000e+00> : vector<8x16xf32>
    %125 = tpu.matmul %121, %124, %cst_89 {dimension_numbers = #tpu.dot_dimension_numbers<[1], [0], [0], [1], [0, 0, 1, 1], [], []>} : vector<8x32xf32>, vector<32x16xf32>, vector<8x16xf32> -> vector<8x16xf32>
    %cst_90 = arith.constant 2.500000e-01 : f32
    %126 = vector.broadcast %cst_90 : f32 to vector<8x16xf32>
    %127 = arith.mulf %125, %126 : vector<8x16xf32>
    %c0_91 = arith.constant 0 : index
    %c0_92 = arith.constant 0 : index
    %c0_93 = arith.constant 0 : index
    %c0_94 = arith.constant 0 : index
    %128 = vector.load %arg14[%c0_91, %c0_92, %c0_93, %c0_94] : memref<2x2x32x16xf32, #tpu.memory_space<vmem>>, vector<1x1x32x16xf32>
    %129 = vector.shape_cast %128 : vector<1x1x32x16xf32> to vector<32x16xf32>
    %cst_95 = arith.constant dense<0.000000e+00> : vector<8x16xf32>
    %130 = tpu.matmul %3, %129, %cst_95 {dimension_numbers = #tpu.dot_dimension_numbers<[1], [0], [0], [1], [0, 0, 1, 1], [], []>} : vector<8x32xf32>, vector<32x16xf32>, vector<8x16xf32> -> vector<8x16xf32>
    %c0_96 = arith.constant 0 : index
    %c0_97 = arith.constant 0 : index
    %c0_98 = arith.constant 0 : index
    %c0_99 = arith.constant 0 : index
    %131 = vector.load %arg15[%c0_96, %c0_97, %c0_98, %c0_99] : memref<2x2x32x16xf32, #tpu.memory_space<vmem>>, vector<1x1x32x16xf32>
    %132 = vector.shape_cast %131 : vector<1x1x32x16xf32> to vector<32x16xf32>
    %cst_100 = arith.constant dense<0.000000e+00> : vector<8x16xf32>
    %133 = tpu.matmul %3, %132, %cst_100 {dimension_numbers = #tpu.dot_dimension_numbers<[1], [0], [0], [1], [0, 0, 1, 1], [], []>} : vector<8x32xf32>, vector<32x16xf32>, vector<8x16xf32> -> vector<8x16xf32>
    "tpu.trace_start"() <{level = 10 : i32, message = "qd,kd->qk"}> : () -> ()
    %cst_101 = arith.constant dense<0.000000e+00> : vector<8x8xf32>
    %134 = tpu.matmul %127, %130, %cst_101 {dimension_numbers = #tpu.dot_dimension_numbers<[1], [1], [0], [0], [0, 0, 1, 0], [], []>} : vector<8x16xf32>, vector<8x16xf32>, vector<8x8xf32> -> vector<8x8xf32>
    %cst_102 = arith.constant 0.000000e+00 : f32
    "tpu.trace_stop"() : () -> ()
    %135 = vector.broadcast %cst_102 : f32 to vector<1x8xf32>
    %136 = arith.cmpf oeq, %7, %135 : vector<1x8xf32>
    %cst_103 = arith.constant -1.000000e+09 : f32
    %137 = vector.shape_cast %136 : vector<1x8xi1> to vector<1x8xi1>
    %138 = vector.broadcast %137 : vector<1x8xi1> to vector<8x8xi1>
    %139 = vector.broadcast %cst_103 : f32 to vector<8x8xf32>
    %140 = arith.select %138, %139, %134 : vector<8x8xi1>, vector<8x8xf32>
    %cst_104 = arith.constant dense<0xFF800000> : vector<8xf32>
    %141 = vector.multi_reduction <maximumf>, %140, %cst_104 [1] : vector<8x8xf32> to vector<8xf32>
    %142 = vector.shape_cast %141 : vector<8xf32> to vector<8x1xf32>
    %143 = vector.broadcast %142 : vector<8x1xf32> to vector<8x8xf32>
    %144 = arith.subf %140, %143 : vector<8x8xf32>
    %145 = math.exp %144 : vector<8x8xf32>
    %cst_105 = arith.constant dense<0.000000e+00> : vector<8xf32>
    %146 = vector.multi_reduction <add>, %145, %cst_105 [1] : vector<8x8xf32> to vector<8xf32>
    %147 = vector.shape_cast %146 : vector<8xf32> to vector<8x1xf32>
    %148 = tpu.reciprocal %147 {approx = true} : vector<8x1xf32> -> vector<8x1xf32>
    %149 = vector.broadcast %148 : vector<8x1xf32> to vector<8x8xf32>
    %150 = arith.mulf %145, %149 : vector<8x8xf32>
    %cst_106 = arith.constant dense<0.000000e+00> : vector<8x16xf32>
    %151 = tpu.matmul %150, %133, %cst_106 {dimension_numbers = #tpu.dot_dimension_numbers<[1], [0], [0], [1], [0, 0, 1, 1], [], []>} : vector<8x8xf32>, vector<8x16xf32>, vector<8x16xf32> -> vector<8x16xf32>
    %c0_107 = arith.constant 0 : index
    %c0_108 = arith.constant 0 : index
    %c0_109 = arith.constant 0 : index
    %c0_110 = arith.constant 0 : index
    %152 = vector.load %arg16[%c0_107, %c0_108, %c0_109, %c0_110] : memref<2x2x16x32xf32, #tpu.memory_space<vmem>>, vector<1x1x16x32xf32>
    %153 = vector.shape_cast %152 : vector<1x1x16x32xf32> to vector<16x32xf32>
    %cst_111 = arith.constant dense<0.000000e+00> : vector<8x32xf32>
    %154 = tpu.matmul %151, %153, %cst_111 {dimension_numbers = #tpu.dot_dimension_numbers<[1], [0], [0], [1], [0, 0, 1, 1], [], []>} : vector<8x16xf32>, vector<16x32xf32>, vector<8x32xf32> -> vector<8x32xf32>
    %155 = arith.addf %122, %154 : vector<8x32xf32>
    %c0_112 = arith.constant 0 : index
    %c1_113 = arith.constant 1 : index
    %c0_114 = arith.constant 0 : index
    %c0_115 = arith.constant 0 : index
    %156 = vector.load %arg13[%c0_112, %c1_113, %c0_114, %c0_115] : memref<2x2x32x16xf32, #tpu.memory_space<vmem>>, vector<1x1x32x16xf32>
    %157 = vector.shape_cast %156 : vector<1x1x32x16xf32> to vector<32x16xf32>
    %cst_116 = arith.constant dense<0.000000e+00> : vector<8x16xf32>
    %158 = tpu.matmul %121, %157, %cst_116 {dimension_numbers = #tpu.dot_dimension_numbers<[1], [0], [0], [1], [0, 0, 1, 1], [], []>} : vector<8x32xf32>, vector<32x16xf32>, vector<8x16xf32> -> vector<8x16xf32>
    %cst_117 = arith.constant 2.500000e-01 : f32
    %159 = vector.broadcast %cst_117 : f32 to vector<8x16xf32>
    %160 = arith.mulf %158, %159 : vector<8x16xf32>
    %c0_118 = arith.constant 0 : index
    %c1_119 = arith.constant 1 : index
    %c0_120 = arith.constant 0 : index
    %c0_121 = arith.constant 0 : index
    %161 = vector.load %arg14[%c0_118, %c1_119, %c0_120, %c0_121] : memref<2x2x32x16xf32, #tpu.memory_space<vmem>>, vector<1x1x32x16xf32>
    %162 = vector.shape_cast %161 : vector<1x1x32x16xf32> to vector<32x16xf32>
    %cst_122 = arith.constant dense<0.000000e+00> : vector<8x16xf32>
    %163 = tpu.matmul %3, %162, %cst_122 {dimension_numbers = #tpu.dot_dimension_numbers<[1], [0], [0], [1], [0, 0, 1, 1], [], []>} : vector<8x32xf32>, vector<32x16xf32>, vector<8x16xf32> -> vector<8x16xf32>
    %c0_123 = arith.constant 0 : index
    %c1_124 = arith.constant 1 : index
    %c0_125 = arith.constant 0 : index
    %c0_126 = arith.constant 0 : index
    %164 = vector.load %arg15[%c0_123, %c1_124, %c0_125, %c0_126] : memref<2x2x32x16xf32, #tpu.memory_space<vmem>>, vector<1x1x32x16xf32>
    %165 = vector.shape_cast %164 : vector<1x1x32x16xf32> to vector<32x16xf32>
    %cst_127 = arith.constant dense<0.000000e+00> : vector<8x16xf32>
    %166 = tpu.matmul %3, %165, %cst_127 {dimension_numbers = #tpu.dot_dimension_numbers<[1], [0], [0], [1], [0, 0, 1, 1], [], []>} : vector<8x32xf32>, vector<32x16xf32>, vector<8x16xf32> -> vector<8x16xf32>
    "tpu.trace_start"() <{level = 10 : i32, message = "qd,kd->qk"}> : () -> ()
    %cst_128 = arith.constant dense<0.000000e+00> : vector<8x8xf32>
    %167 = tpu.matmul %160, %163, %cst_128 {dimension_numbers = #tpu.dot_dimension_numbers<[1], [1], [0], [0], [0, 0, 1, 0], [], []>} : vector<8x16xf32>, vector<8x16xf32>, vector<8x8xf32> -> vector<8x8xf32>
    %cst_129 = arith.constant 0.000000e+00 : f32
    "tpu.trace_stop"() : () -> ()
    %168 = vector.broadcast %cst_129 : f32 to vector<1x8xf32>
    %169 = arith.cmpf oeq, %7, %168 : vector<1x8xf32>
    %cst_130 = arith.constant -1.000000e+09 : f32
    %170 = vector.shape_cast %169 : vector<1x8xi1> to vector<1x8xi1>
    %171 = vector.broadcast %170 : vector<1x8xi1> to vector<8x8xi1>
    %172 = vector.broadcast %cst_130 : f32 to vector<8x8xf32>
    %173 = arith.select %171, %172, %167 : vector<8x8xi1>, vector<8x8xf32>
    %cst_131 = arith.constant dense<0xFF800000> : vector<8xf32>
    %174 = vector.multi_reduction <maximumf>, %173, %cst_131 [1] : vector<8x8xf32> to vector<8xf32>
    %175 = vector.shape_cast %174 : vector<8xf32> to vector<8x1xf32>
    %176 = vector.broadcast %175 : vector<8x1xf32> to vector<8x8xf32>
    %177 = arith.subf %173, %176 : vector<8x8xf32>
    %178 = math.exp %177 : vector<8x8xf32>
    %cst_132 = arith.constant dense<0.000000e+00> : vector<8xf32>
    %179 = vector.multi_reduction <add>, %178, %cst_132 [1] : vector<8x8xf32> to vector<8xf32>
    %180 = vector.shape_cast %179 : vector<8xf32> to vector<8x1xf32>
    %181 = tpu.reciprocal %180 {approx = true} : vector<8x1xf32> -> vector<8x1xf32>
    %182 = vector.broadcast %181 : vector<8x1xf32> to vector<8x8xf32>
    %183 = arith.mulf %178, %182 : vector<8x8xf32>
    %cst_133 = arith.constant dense<0.000000e+00> : vector<8x16xf32>
    %184 = tpu.matmul %183, %166, %cst_133 {dimension_numbers = #tpu.dot_dimension_numbers<[1], [0], [0], [1], [0, 0, 1, 1], [], []>} : vector<8x8xf32>, vector<8x16xf32>, vector<8x16xf32> -> vector<8x16xf32>
    %c0_134 = arith.constant 0 : index
    %c1_135 = arith.constant 1 : index
    %c0_136 = arith.constant 0 : index
    %c0_137 = arith.constant 0 : index
    %185 = vector.load %arg16[%c0_134, %c1_135, %c0_136, %c0_137] : memref<2x2x16x32xf32, #tpu.memory_space<vmem>>, vector<1x1x16x32xf32>
    %186 = vector.shape_cast %185 : vector<1x1x16x32xf32> to vector<16x32xf32>
    %cst_138 = arith.constant dense<0.000000e+00> : vector<8x32xf32>
    %187 = tpu.matmul %184, %186, %cst_138 {dimension_numbers = #tpu.dot_dimension_numbers<[1], [0], [0], [1], [0, 0, 1, 1], [], []>} : vector<8x16xf32>, vector<16x32xf32>, vector<8x32xf32> -> vector<8x32xf32>
    %188 = arith.addf %155, %187 : vector<8x32xf32>
    %189 = arith.addf %188, %121 : vector<8x32xf32>
    %c0_139 = arith.constant 0 : index
    %c0_140 = arith.constant 0 : index
    %c0_141 = arith.constant 0 : index
    %190 = vector.load %arg17[%c0_139, %c0_140, %c0_141] : memref<2x1x32xf32, #tpu.memory_space<vmem>>, vector<1x1x32xf32>
    %191 = vector.shape_cast %190 : vector<1x1x32xf32> to vector<1x32xf32>
    %c0_142 = arith.constant 0 : index
    %c0_143 = arith.constant 0 : index
    %c0_144 = arith.constant 0 : index
    %192 = vector.load %arg18[%c0_142, %c0_143, %c0_144] : memref<2x1x32xf32, #tpu.memory_space<vmem>>, vector<1x1x32xf32>
    %193 = vector.shape_cast %192 : vector<1x1x32xf32> to vector<1x32xf32>
    %cst_145 = arith.constant dense<0.000000e+00> : vector<8xf32>
    %194 = vector.multi_reduction <add>, %189, %cst_145 [1] : vector<8x32xf32> to vector<8xf32>
    %195 = vector.shape_cast %194 : vector<8xf32> to vector<8x1xf32>
    %cst_146 = arith.constant 3.200000e+01 : f32
    %196 = vector.broadcast %cst_146 : f32 to vector<8x1xf32>
    %197 = arith.divf %195, %196 : vector<8x1xf32>
    %198 = vector.broadcast %197 : vector<8x1xf32> to vector<8x32xf32>
    %199 = arith.subf %189, %198 : vector<8x32xf32>
    %200 = arith.mulf %199, %199 : vector<8x32xf32>
    %cst_147 = arith.constant dense<0.000000e+00> : vector<8xf32>
    %201 = vector.multi_reduction <add>, %200, %cst_147 [1] : vector<8x32xf32> to vector<8xf32>
    %202 = vector.shape_cast %201 : vector<8xf32> to vector<8x1xf32>
    %cst_148 = arith.constant 3.200000e+01 : f32
    %203 = vector.broadcast %cst_148 : f32 to vector<8x1xf32>
    %204 = arith.divf %202, %203 : vector<8x1xf32>
    %205 = vector.broadcast %197 : vector<8x1xf32> to vector<8x32xf32>
    %206 = arith.subf %189, %205 : vector<8x32xf32>
    %cst_149 = arith.constant 9.99999997E-7 : f32
    %207 = vector.broadcast %cst_149 : f32 to vector<8x1xf32>
    %208 = arith.addf %204, %207 : vector<8x1xf32>
    %209 = math.rsqrt %208 : vector<8x1xf32>
    %210 = vector.broadcast %209 : vector<8x1xf32> to vector<8x32xf32>
    %211 = arith.mulf %206, %210 : vector<8x32xf32>
    %212 = vector.broadcast %191 : vector<1x32xf32> to vector<8x32xf32>
    %213 = arith.mulf %211, %212 : vector<8x32xf32>
    %214 = vector.broadcast %193 : vector<1x32xf32> to vector<8x32xf32>
    %215 = arith.addf %213, %214 : vector<8x32xf32>
    %c0_150 = arith.constant 0 : index
    %c0_151 = arith.constant 0 : index
    %c0_152 = arith.constant 0 : index
    %216 = vector.load %arg19[%c0_150, %c0_151, %c0_152] : memref<2x32x64xf32, #tpu.memory_space<vmem>>, vector<1x32x64xf32>
    %217 = vector.shape_cast %216 : vector<1x32x64xf32> to vector<32x64xf32>
    %cst_153 = arith.constant dense<0.000000e+00> : vector<8x64xf32>
    %218 = tpu.matmul %215, %217, %cst_153 {dimension_numbers = #tpu.dot_dimension_numbers<[1], [0], [0], [1], [0, 0, 1, 1], [], []>} : vector<8x32xf32>, vector<32x64xf32>, vector<8x64xf32> -> vector<8x64xf32>
    %c0_154 = arith.constant 0 : index
    %c0_155 = arith.constant 0 : index
    %c0_156 = arith.constant 0 : index
    %219 = vector.load %arg20[%c0_154, %c0_155, %c0_156] : memref<2x1x64xf32, #tpu.memory_space<vmem>>, vector<1x1x64xf32>
    %220 = vector.shape_cast %219 : vector<1x1x64xf32> to vector<1x64xf32>
    %221 = vector.broadcast %220 : vector<1x64xf32> to vector<8x64xf32>
    %222 = arith.addf %218, %221 : vector<8x64xf32>
    %cst_157 = arith.constant 0.000000e+00 : f32
    %223 = vector.broadcast %cst_157 : f32 to vector<8x64xf32>
    %224 = arith.maximumf %222, %223 : vector<8x64xf32>
    %c0_158 = arith.constant 0 : index
    %c0_159 = arith.constant 0 : index
    %c0_160 = arith.constant 0 : index
    %225 = vector.load %arg21[%c0_158, %c0_159, %c0_160] : memref<2x64x32xf32, #tpu.memory_space<vmem>>, vector<1x64x32xf32>
    %226 = vector.shape_cast %225 : vector<1x64x32xf32> to vector<64x32xf32>
    %cst_161 = arith.constant dense<0.000000e+00> : vector<8x32xf32>
    %227 = tpu.matmul %224, %226, %cst_161 {dimension_numbers = #tpu.dot_dimension_numbers<[1], [0], [0], [1], [0, 0, 1, 1], [], []>} : vector<8x64xf32>, vector<64x32xf32>, vector<8x32xf32> -> vector<8x32xf32>
    %c0_162 = arith.constant 0 : index
    %c0_163 = arith.constant 0 : index
    %c0_164 = arith.constant 0 : index
    %228 = vector.load %arg22[%c0_162, %c0_163, %c0_164] : memref<2x1x32xf32, #tpu.memory_space<vmem>>, vector<1x1x32xf32>
    %229 = vector.shape_cast %228 : vector<1x1x32xf32> to vector<1x32xf32>
    %230 = vector.broadcast %229 : vector<1x32xf32> to vector<8x32xf32>
    %231 = arith.addf %227, %230 : vector<8x32xf32>
    %232 = arith.addf %231, %215 : vector<8x32xf32>
    %c0_165 = arith.constant 0 : index
    %c0_166 = arith.constant 0 : index
    %c0_167 = arith.constant 0 : index
    %233 = vector.load %arg23[%c0_165, %c0_166, %c0_167] : memref<2x1x32xf32, #tpu.memory_space<vmem>>, vector<1x1x32xf32>
    %234 = vector.shape_cast %233 : vector<1x1x32xf32> to vector<1x32xf32>
    %c0_168 = arith.constant 0 : index
    %c0_169 = arith.constant 0 : index
    %c0_170 = arith.constant 0 : index
    %235 = vector.load %arg24[%c0_168, %c0_169, %c0_170] : memref<2x1x32xf32, #tpu.memory_space<vmem>>, vector<1x1x32xf32>
    %236 = vector.shape_cast %235 : vector<1x1x32xf32> to vector<1x32xf32>
    %cst_171 = arith.constant dense<0.000000e+00> : vector<8xf32>
    %237 = vector.multi_reduction <add>, %232, %cst_171 [1] : vector<8x32xf32> to vector<8xf32>
    %238 = vector.shape_cast %237 : vector<8xf32> to vector<8x1xf32>
    %cst_172 = arith.constant 3.200000e+01 : f32
    %239 = vector.broadcast %cst_172 : f32 to vector<8x1xf32>
    %240 = arith.divf %238, %239 : vector<8x1xf32>
    %241 = vector.broadcast %240 : vector<8x1xf32> to vector<8x32xf32>
    %242 = arith.subf %232, %241 : vector<8x32xf32>
    %243 = arith.mulf %242, %242 : vector<8x32xf32>
    %cst_173 = arith.constant dense<0.000000e+00> : vector<8xf32>
    %244 = vector.multi_reduction <add>, %243, %cst_173 [1] : vector<8x32xf32> to vector<8xf32>
    %245 = vector.shape_cast %244 : vector<8xf32> to vector<8x1xf32>
    %cst_174 = arith.constant 3.200000e+01 : f32
    %246 = vector.broadcast %cst_174 : f32 to vector<8x1xf32>
    %247 = arith.divf %245, %246 : vector<8x1xf32>
    %248 = vector.broadcast %240 : vector<8x1xf32> to vector<8x32xf32>
    %249 = arith.subf %232, %248 : vector<8x32xf32>
    %cst_175 = arith.constant 9.99999997E-7 : f32
    %250 = vector.broadcast %cst_175 : f32 to vector<8x1xf32>
    %251 = arith.addf %247, %250 : vector<8x1xf32>
    %252 = math.rsqrt %251 : vector<8x1xf32>
    %253 = vector.broadcast %252 : vector<8x1xf32> to vector<8x32xf32>
    %254 = arith.mulf %249, %253 : vector<8x32xf32>
    %255 = vector.broadcast %234 : vector<1x32xf32> to vector<8x32xf32>
    %256 = arith.mulf %254, %255 : vector<8x32xf32>
    %257 = vector.broadcast %236 : vector<1x32xf32> to vector<8x32xf32>
    %258 = arith.addf %256, %257 : vector<8x32xf32>
    %cst_176 = arith.constant 0.000000e+00 : f32
    %259 = vector.broadcast %cst_176 : f32 to vector<8x32xf32>
    %c1_177 = arith.constant 1 : index
    %c0_178 = arith.constant 0 : index
    %c0_179 = arith.constant 0 : index
    %c0_180 = arith.constant 0 : index
    %260 = vector.load %arg7[%c1_177, %c0_178, %c0_179, %c0_180] : memref<2x2x32x16xf32, #tpu.memory_space<vmem>>, vector<1x1x32x16xf32>
    %261 = vector.shape_cast %260 : vector<1x1x32x16xf32> to vector<32x16xf32>
    %cst_181 = arith.constant dense<0.000000e+00> : vector<8x16xf32>
    %262 = tpu.matmul %258, %261, %cst_181 {dimension_numbers = #tpu.dot_dimension_numbers<[1], [0], [0], [1], [0, 0, 1, 1], [], []>} : vector<8x32xf32>, vector<32x16xf32>, vector<8x16xf32> -> vector<8x16xf32>
    %cst_182 = arith.constant 2.500000e-01 : f32
    %263 = vector.broadcast %cst_182 : f32 to vector<8x16xf32>
    %264 = arith.mulf %262, %263 : vector<8x16xf32>
    %c1_183 = arith.constant 1 : index
    %c0_184 = arith.constant 0 : index
    %c0_185 = arith.constant 0 : index
    %c0_186 = arith.constant 0 : index
    %265 = vector.load %arg8[%c1_183, %c0_184, %c0_185, %c0_186] : memref<2x2x32x16xf32, #tpu.memory_space<vmem>>, vector<1x1x32x16xf32>
    %266 = vector.shape_cast %265 : vector<1x1x32x16xf32> to vector<32x16xf32>
    %cst_187 = arith.constant dense<0.000000e+00> : vector<8x16xf32>
    %267 = tpu.matmul %258, %266, %cst_187 {dimension_numbers = #tpu.dot_dimension_numbers<[1], [0], [0], [1], [0, 0, 1, 1], [], []>} : vector<8x32xf32>, vector<32x16xf32>, vector<8x16xf32> -> vector<8x16xf32>
    %c1_188 = arith.constant 1 : index
    %c0_189 = arith.constant 0 : index
    %c0_190 = arith.constant 0 : index
    %c0_191 = arith.constant 0 : index
    %268 = vector.load %arg9[%c1_188, %c0_189, %c0_190, %c0_191] : memref<2x2x32x16xf32, #tpu.memory_space<vmem>>, vector<1x1x32x16xf32>
    %269 = vector.shape_cast %268 : vector<1x1x32x16xf32> to vector<32x16xf32>
    %cst_192 = arith.constant dense<0.000000e+00> : vector<8x16xf32>
    %270 = tpu.matmul %258, %269, %cst_192 {dimension_numbers = #tpu.dot_dimension_numbers<[1], [0], [0], [1], [0, 0, 1, 1], [], []>} : vector<8x32xf32>, vector<32x16xf32>, vector<8x16xf32> -> vector<8x16xf32>
    "tpu.trace_start"() <{level = 10 : i32, message = "qd,kd->qk"}> : () -> ()
    %cst_193 = arith.constant dense<0.000000e+00> : vector<8x8xf32>
    %271 = tpu.matmul %264, %267, %cst_193 {dimension_numbers = #tpu.dot_dimension_numbers<[1], [1], [0], [0], [0, 0, 1, 0], [], []>} : vector<8x16xf32>, vector<8x16xf32>, vector<8x8xf32> -> vector<8x8xf32>
    %cst_194 = arith.constant 0.000000e+00 : f32
    "tpu.trace_stop"() : () -> ()
    %272 = vector.broadcast %cst_194 : f32 to vector<8x8xf32>
    %273 = arith.cmpf oeq, %5, %272 : vector<8x8xf32>
    %cst_195 = arith.constant -1.000000e+09 : f32
    %274 = vector.broadcast %cst_195 : f32 to vector<8x8xf32>
    %275 = arith.select %273, %274, %271 : vector<8x8xi1>, vector<8x8xf32>
    %cst_196 = arith.constant dense<0xFF800000> : vector<8xf32>
    %276 = vector.multi_reduction <maximumf>, %275, %cst_196 [1] : vector<8x8xf32> to vector<8xf32>
    %277 = vector.shape_cast %276 : vector<8xf32> to vector<8x1xf32>
    %278 = vector.broadcast %277 : vector<8x1xf32> to vector<8x8xf32>
    %279 = arith.subf %275, %278 : vector<8x8xf32>
    %280 = math.exp %279 : vector<8x8xf32>
    %cst_197 = arith.constant dense<0.000000e+00> : vector<8xf32>
    %281 = vector.multi_reduction <add>, %280, %cst_197 [1] : vector<8x8xf32> to vector<8xf32>
    %282 = vector.shape_cast %281 : vector<8xf32> to vector<8x1xf32>
    %283 = tpu.reciprocal %282 {approx = true} : vector<8x1xf32> -> vector<8x1xf32>
    %284 = vector.broadcast %283 : vector<8x1xf32> to vector<8x8xf32>
    %285 = arith.mulf %280, %284 : vector<8x8xf32>
    %cst_198 = arith.constant dense<0.000000e+00> : vector<8x16xf32>
    %286 = tpu.matmul %285, %270, %cst_198 {dimension_numbers = #tpu.dot_dimension_numbers<[1], [0], [0], [1], [0, 0, 1, 1], [], []>} : vector<8x8xf32>, vector<8x16xf32>, vector<8x16xf32> -> vector<8x16xf32>
    %c1_199 = arith.constant 1 : index
    %c0_200 = arith.constant 0 : index
    %c0_201 = arith.constant 0 : index
    %c0_202 = arith.constant 0 : index
    %287 = vector.load %arg10[%c1_199, %c0_200, %c0_201, %c0_202] : memref<2x2x16x32xf32, #tpu.memory_space<vmem>>, vector<1x1x16x32xf32>
    %288 = vector.shape_cast %287 : vector<1x1x16x32xf32> to vector<16x32xf32>
    %cst_203 = arith.constant dense<0.000000e+00> : vector<8x32xf32>
    %289 = tpu.matmul %286, %288, %cst_203 {dimension_numbers = #tpu.dot_dimension_numbers<[1], [0], [0], [1], [0, 0, 1, 1], [], []>} : vector<8x16xf32>, vector<16x32xf32>, vector<8x32xf32> -> vector<8x32xf32>
    %290 = arith.addf %259, %289 : vector<8x32xf32>
    %c1_204 = arith.constant 1 : index
    %c1_205 = arith.constant 1 : index
    %c0_206 = arith.constant 0 : index
    %c0_207 = arith.constant 0 : index
    %291 = vector.load %arg7[%c1_204, %c1_205, %c0_206, %c0_207] : memref<2x2x32x16xf32, #tpu.memory_space<vmem>>, vector<1x1x32x16xf32>
    %292 = vector.shape_cast %291 : vector<1x1x32x16xf32> to vector<32x16xf32>
    %cst_208 = arith.constant dense<0.000000e+00> : vector<8x16xf32>
    %293 = tpu.matmul %258, %292, %cst_208 {dimension_numbers = #tpu.dot_dimension_numbers<[1], [0], [0], [1], [0, 0, 1, 1], [], []>} : vector<8x32xf32>, vector<32x16xf32>, vector<8x16xf32> -> vector<8x16xf32>
    %cst_209 = arith.constant 2.500000e-01 : f32
    %294 = vector.broadcast %cst_209 : f32 to vector<8x16xf32>
    %295 = arith.mulf %293, %294 : vector<8x16xf32>
    %c1_210 = arith.constant 1 : index
    %c1_211 = arith.constant 1 : index
    %c0_212 = arith.constant 0 : index
    %c0_213 = arith.constant 0 : index
    %296 = vector.load %arg8[%c1_210, %c1_211, %c0_212, %c0_213] : memref<2x2x32x16xf32, #tpu.memory_space<vmem>>, vector<1x1x32x16xf32>
    %297 = vector.shape_cast %296 : vector<1x1x32x16xf32> to vector<32x16xf32>
    %cst_214 = arith.constant dense<0.000000e+00> : vector<8x16xf32>
    %298 = tpu.matmul %258, %297, %cst_214 {dimension_numbers = #tpu.dot_dimension_numbers<[1], [0], [0], [1], [0, 0, 1, 1], [], []>} : vector<8x32xf32>, vector<32x16xf32>, vector<8x16xf32> -> vector<8x16xf32>
    %c1_215 = arith.constant 1 : index
    %c1_216 = arith.constant 1 : index
    %c0_217 = arith.constant 0 : index
    %c0_218 = arith.constant 0 : index
    %299 = vector.load %arg9[%c1_215, %c1_216, %c0_217, %c0_218] : memref<2x2x32x16xf32, #tpu.memory_space<vmem>>, vector<1x1x32x16xf32>
    %300 = vector.shape_cast %299 : vector<1x1x32x16xf32> to vector<32x16xf32>
    %cst_219 = arith.constant dense<0.000000e+00> : vector<8x16xf32>
    %301 = tpu.matmul %258, %300, %cst_219 {dimension_numbers = #tpu.dot_dimension_numbers<[1], [0], [0], [1], [0, 0, 1, 1], [], []>} : vector<8x32xf32>, vector<32x16xf32>, vector<8x16xf32> -> vector<8x16xf32>
    "tpu.trace_start"() <{level = 10 : i32, message = "qd,kd->qk"}> : () -> ()
    %cst_220 = arith.constant dense<0.000000e+00> : vector<8x8xf32>
    %302 = tpu.matmul %295, %298, %cst_220 {dimension_numbers = #tpu.dot_dimension_numbers<[1], [1], [0], [0], [0, 0, 1, 0], [], []>} : vector<8x16xf32>, vector<8x16xf32>, vector<8x8xf32> -> vector<8x8xf32>
    %cst_221 = arith.constant 0.000000e+00 : f32
    "tpu.trace_stop"() : () -> ()
    %303 = vector.broadcast %cst_221 : f32 to vector<8x8xf32>
    %304 = arith.cmpf oeq, %5, %303 : vector<8x8xf32>
    %cst_222 = arith.constant -1.000000e+09 : f32
    %305 = vector.broadcast %cst_222 : f32 to vector<8x8xf32>
    %306 = arith.select %304, %305, %302 : vector<8x8xi1>, vector<8x8xf32>
    %cst_223 = arith.constant dense<0xFF800000> : vector<8xf32>
    %307 = vector.multi_reduction <maximumf>, %306, %cst_223 [1] : vector<8x8xf32> to vector<8xf32>
    %308 = vector.shape_cast %307 : vector<8xf32> to vector<8x1xf32>
    %309 = vector.broadcast %308 : vector<8x1xf32> to vector<8x8xf32>
    %310 = arith.subf %306, %309 : vector<8x8xf32>
    %311 = math.exp %310 : vector<8x8xf32>
    %cst_224 = arith.constant dense<0.000000e+00> : vector<8xf32>
    %312 = vector.multi_reduction <add>, %311, %cst_224 [1] : vector<8x8xf32> to vector<8xf32>
    %313 = vector.shape_cast %312 : vector<8xf32> to vector<8x1xf32>
    %314 = tpu.reciprocal %313 {approx = true} : vector<8x1xf32> -> vector<8x1xf32>
    %315 = vector.broadcast %314 : vector<8x1xf32> to vector<8x8xf32>
    %316 = arith.mulf %311, %315 : vector<8x8xf32>
    %cst_225 = arith.constant dense<0.000000e+00> : vector<8x16xf32>
    %317 = tpu.matmul %316, %301, %cst_225 {dimension_numbers = #tpu.dot_dimension_numbers<[1], [0], [0], [1], [0, 0, 1, 1], [], []>} : vector<8x8xf32>, vector<8x16xf32>, vector<8x16xf32> -> vector<8x16xf32>
    %c1_226 = arith.constant 1 : index
    %c1_227 = arith.constant 1 : index
    %c0_228 = arith.constant 0 : index
    %c0_229 = arith.constant 0 : index
    %318 = vector.load %arg10[%c1_226, %c1_227, %c0_228, %c0_229] : memref<2x2x16x32xf32, #tpu.memory_space<vmem>>, vector<1x1x16x32xf32>
    %319 = vector.shape_cast %318 : vector<1x1x16x32xf32> to vector<16x32xf32>
    %cst_230 = arith.constant dense<0.000000e+00> : vector<8x32xf32>
    %320 = tpu.matmul %317, %319, %cst_230 {dimension_numbers = #tpu.dot_dimension_numbers<[1], [0], [0], [1], [0, 0, 1, 1], [], []>} : vector<8x16xf32>, vector<16x32xf32>, vector<8x32xf32> -> vector<8x32xf32>
    %321 = arith.addf %290, %320 : vector<8x32xf32>
    %322 = arith.addf %321, %258 : vector<8x32xf32>
    %c1_231 = arith.constant 1 : index
    %c0_232 = arith.constant 0 : index
    %c0_233 = arith.constant 0 : index
    %323 = vector.load %arg11[%c1_231, %c0_232, %c0_233] : memref<2x1x32xf32, #tpu.memory_space<vmem>>, vector<1x1x32xf32>
    %324 = vector.shape_cast %323 : vector<1x1x32xf32> to vector<1x32xf32>
    %c1_234 = arith.constant 1 : index
    %c0_235 = arith.constant 0 : index
    %c0_236 = arith.constant 0 : index
    %325 = vector.load %arg12[%c1_234, %c0_235, %c0_236] : memref<2x1x32xf32, #tpu.memory_space<vmem>>, vector<1x1x32xf32>
    %326 = vector.shape_cast %325 : vector<1x1x32xf32> to vector<1x32xf32>
    %cst_237 = arith.constant dense<0.000000e+00> : vector<8xf32>
    %327 = vector.multi_reduction <add>, %322, %cst_237 [1] : vector<8x32xf32> to vector<8xf32>
    %328 = vector.shape_cast %327 : vector<8xf32> to vector<8x1xf32>
    %cst_238 = arith.constant 3.200000e+01 : f32
    %329 = vector.broadcast %cst_238 : f32 to vector<8x1xf32>
    %330 = arith.divf %328, %329 : vector<8x1xf32>
    %331 = vector.broadcast %330 : vector<8x1xf32> to vector<8x32xf32>
    %332 = arith.subf %322, %331 : vector<8x32xf32>
    %333 = arith.mulf %332, %332 : vector<8x32xf32>
    %cst_239 = arith.constant dense<0.000000e+00> : vector<8xf32>
    %334 = vector.multi_reduction <add>, %333, %cst_239 [1] : vector<8x32xf32> to vector<8xf32>
    %335 = vector.shape_cast %334 : vector<8xf32> to vector<8x1xf32>
    %cst_240 = arith.constant 3.200000e+01 : f32
    %336 = vector.broadcast %cst_240 : f32 to vector<8x1xf32>
    %337 = arith.divf %335, %336 : vector<8x1xf32>
    %338 = vector.broadcast %330 : vector<8x1xf32> to vector<8x32xf32>
    %339 = arith.subf %322, %338 : vector<8x32xf32>
    %cst_241 = arith.constant 9.99999997E-7 : f32
    %340 = vector.broadcast %cst_241 : f32 to vector<8x1xf32>
    %341 = arith.addf %337, %340 : vector<8x1xf32>
    %342 = math.rsqrt %341 : vector<8x1xf32>
    %343 = vector.broadcast %342 : vector<8x1xf32> to vector<8x32xf32>
    %344 = arith.mulf %339, %343 : vector<8x32xf32>
    %345 = vector.broadcast %324 : vector<1x32xf32> to vector<8x32xf32>
    %346 = arith.mulf %344, %345 : vector<8x32xf32>
    %347 = vector.broadcast %326 : vector<1x32xf32> to vector<8x32xf32>
    %348 = arith.addf %346, %347 : vector<8x32xf32>
    %cst_242 = arith.constant 0.000000e+00 : f32
    %349 = vector.broadcast %cst_242 : f32 to vector<8x32xf32>
    %c1_243 = arith.constant 1 : index
    %c0_244 = arith.constant 0 : index
    %c0_245 = arith.constant 0 : index
    %c0_246 = arith.constant 0 : index
    %350 = vector.load %arg13[%c1_243, %c0_244, %c0_245, %c0_246] : memref<2x2x32x16xf32, #tpu.memory_space<vmem>>, vector<1x1x32x16xf32>
    %351 = vector.shape_cast %350 : vector<1x1x32x16xf32> to vector<32x16xf32>
    %cst_247 = arith.constant dense<0.000000e+00> : vector<8x16xf32>
    %352 = tpu.matmul %348, %351, %cst_247 {dimension_numbers = #tpu.dot_dimension_numbers<[1], [0], [0], [1], [0, 0, 1, 1], [], []>} : vector<8x32xf32>, vector<32x16xf32>, vector<8x16xf32> -> vector<8x16xf32>
    %cst_248 = arith.constant 2.500000e-01 : f32
    %353 = vector.broadcast %cst_248 : f32 to vector<8x16xf32>
    %354 = arith.mulf %352, %353 : vector<8x16xf32>
    %c1_249 = arith.constant 1 : index
    %c0_250 = arith.constant 0 : index
    %c0_251 = arith.constant 0 : index
    %c0_252 = arith.constant 0 : index
    %355 = vector.load %arg14[%c1_249, %c0_250, %c0_251, %c0_252] : memref<2x2x32x16xf32, #tpu.memory_space<vmem>>, vector<1x1x32x16xf32>
    %356 = vector.shape_cast %355 : vector<1x1x32x16xf32> to vector<32x16xf32>
    %cst_253 = arith.constant dense<0.000000e+00> : vector<8x16xf32>
    %357 = tpu.matmul %3, %356, %cst_253 {dimension_numbers = #tpu.dot_dimension_numbers<[1], [0], [0], [1], [0, 0, 1, 1], [], []>} : vector<8x32xf32>, vector<32x16xf32>, vector<8x16xf32> -> vector<8x16xf32>
    %c1_254 = arith.constant 1 : index
    %c0_255 = arith.constant 0 : index
    %c0_256 = arith.constant 0 : index
    %c0_257 = arith.constant 0 : index
    %358 = vector.load %arg15[%c1_254, %c0_255, %c0_256, %c0_257] : memref<2x2x32x16xf32, #tpu.memory_space<vmem>>, vector<1x1x32x16xf32>
    %359 = vector.shape_cast %358 : vector<1x1x32x16xf32> to vector<32x16xf32>
    %cst_258 = arith.constant dense<0.000000e+00> : vector<8x16xf32>
    %360 = tpu.matmul %3, %359, %cst_258 {dimension_numbers = #tpu.dot_dimension_numbers<[1], [0], [0], [1], [0, 0, 1, 1], [], []>} : vector<8x32xf32>, vector<32x16xf32>, vector<8x16xf32> -> vector<8x16xf32>
    "tpu.trace_start"() <{level = 10 : i32, message = "qd,kd->qk"}> : () -> ()
    %cst_259 = arith.constant dense<0.000000e+00> : vector<8x8xf32>
    %361 = tpu.matmul %354, %357, %cst_259 {dimension_numbers = #tpu.dot_dimension_numbers<[1], [1], [0], [0], [0, 0, 1, 0], [], []>} : vector<8x16xf32>, vector<8x16xf32>, vector<8x8xf32> -> vector<8x8xf32>
    %cst_260 = arith.constant 0.000000e+00 : f32
    "tpu.trace_stop"() : () -> ()
    %362 = vector.broadcast %cst_260 : f32 to vector<1x8xf32>
    %363 = arith.cmpf oeq, %7, %362 : vector<1x8xf32>
    %cst_261 = arith.constant -1.000000e+09 : f32
    %364 = vector.shape_cast %363 : vector<1x8xi1> to vector<1x8xi1>
    %365 = vector.broadcast %364 : vector<1x8xi1> to vector<8x8xi1>
    %366 = vector.broadcast %cst_261 : f32 to vector<8x8xf32>
    %367 = arith.select %365, %366, %361 : vector<8x8xi1>, vector<8x8xf32>
    %cst_262 = arith.constant dense<0xFF800000> : vector<8xf32>
    %368 = vector.multi_reduction <maximumf>, %367, %cst_262 [1] : vector<8x8xf32> to vector<8xf32>
    %369 = vector.shape_cast %368 : vector<8xf32> to vector<8x1xf32>
    %370 = vector.broadcast %369 : vector<8x1xf32> to vector<8x8xf32>
    %371 = arith.subf %367, %370 : vector<8x8xf32>
    %372 = math.exp %371 : vector<8x8xf32>
    %cst_263 = arith.constant dense<0.000000e+00> : vector<8xf32>
    %373 = vector.multi_reduction <add>, %372, %cst_263 [1] : vector<8x8xf32> to vector<8xf32>
    %374 = vector.shape_cast %373 : vector<8xf32> to vector<8x1xf32>
    %375 = tpu.reciprocal %374 {approx = true} : vector<8x1xf32> -> vector<8x1xf32>
    %376 = vector.broadcast %375 : vector<8x1xf32> to vector<8x8xf32>
    %377 = arith.mulf %372, %376 : vector<8x8xf32>
    %cst_264 = arith.constant dense<0.000000e+00> : vector<8x16xf32>
    %378 = tpu.matmul %377, %360, %cst_264 {dimension_numbers = #tpu.dot_dimension_numbers<[1], [0], [0], [1], [0, 0, 1, 1], [], []>} : vector<8x8xf32>, vector<8x16xf32>, vector<8x16xf32> -> vector<8x16xf32>
    %c1_265 = arith.constant 1 : index
    %c0_266 = arith.constant 0 : index
    %c0_267 = arith.constant 0 : index
    %c0_268 = arith.constant 0 : index
    %379 = vector.load %arg16[%c1_265, %c0_266, %c0_267, %c0_268] : memref<2x2x16x32xf32, #tpu.memory_space<vmem>>, vector<1x1x16x32xf32>
    %380 = vector.shape_cast %379 : vector<1x1x16x32xf32> to vector<16x32xf32>
    %cst_269 = arith.constant dense<0.000000e+00> : vector<8x32xf32>
    %381 = tpu.matmul %378, %380, %cst_269 {dimension_numbers = #tpu.dot_dimension_numbers<[1], [0], [0], [1], [0, 0, 1, 1], [], []>} : vector<8x16xf32>, vector<16x32xf32>, vector<8x32xf32> -> vector<8x32xf32>
    %382 = arith.addf %349, %381 : vector<8x32xf32>
    %c1_270 = arith.constant 1 : index
    %c1_271 = arith.constant 1 : index
    %c0_272 = arith.constant 0 : index
    %c0_273 = arith.constant 0 : index
    %383 = vector.load %arg13[%c1_270, %c1_271, %c0_272, %c0_273] : memref<2x2x32x16xf32, #tpu.memory_space<vmem>>, vector<1x1x32x16xf32>
    %384 = vector.shape_cast %383 : vector<1x1x32x16xf32> to vector<32x16xf32>
    %cst_274 = arith.constant dense<0.000000e+00> : vector<8x16xf32>
    %385 = tpu.matmul %348, %384, %cst_274 {dimension_numbers = #tpu.dot_dimension_numbers<[1], [0], [0], [1], [0, 0, 1, 1], [], []>} : vector<8x32xf32>, vector<32x16xf32>, vector<8x16xf32> -> vector<8x16xf32>
    %cst_275 = arith.constant 2.500000e-01 : f32
    %386 = vector.broadcast %cst_275 : f32 to vector<8x16xf32>
    %387 = arith.mulf %385, %386 : vector<8x16xf32>
    %c1_276 = arith.constant 1 : index
    %c1_277 = arith.constant 1 : index
    %c0_278 = arith.constant 0 : index
    %c0_279 = arith.constant 0 : index
    %388 = vector.load %arg14[%c1_276, %c1_277, %c0_278, %c0_279] : memref<2x2x32x16xf32, #tpu.memory_space<vmem>>, vector<1x1x32x16xf32>
    %389 = vector.shape_cast %388 : vector<1x1x32x16xf32> to vector<32x16xf32>
    %cst_280 = arith.constant dense<0.000000e+00> : vector<8x16xf32>
    %390 = tpu.matmul %3, %389, %cst_280 {dimension_numbers = #tpu.dot_dimension_numbers<[1], [0], [0], [1], [0, 0, 1, 1], [], []>} : vector<8x32xf32>, vector<32x16xf32>, vector<8x16xf32> -> vector<8x16xf32>
    %c1_281 = arith.constant 1 : index
    %c1_282 = arith.constant 1 : index
    %c0_283 = arith.constant 0 : index
    %c0_284 = arith.constant 0 : index
    %391 = vector.load %arg15[%c1_281, %c1_282, %c0_283, %c0_284] : memref<2x2x32x16xf32, #tpu.memory_space<vmem>>, vector<1x1x32x16xf32>
    %392 = vector.shape_cast %391 : vector<1x1x32x16xf32> to vector<32x16xf32>
    %cst_285 = arith.constant dense<0.000000e+00> : vector<8x16xf32>
    %393 = tpu.matmul %3, %392, %cst_285 {dimension_numbers = #tpu.dot_dimension_numbers<[1], [0], [0], [1], [0, 0, 1, 1], [], []>} : vector<8x32xf32>, vector<32x16xf32>, vector<8x16xf32> -> vector<8x16xf32>
    "tpu.trace_start"() <{level = 10 : i32, message = "qd,kd->qk"}> : () -> ()
    %cst_286 = arith.constant dense<0.000000e+00> : vector<8x8xf32>
    %394 = tpu.matmul %387, %390, %cst_286 {dimension_numbers = #tpu.dot_dimension_numbers<[1], [1], [0], [0], [0, 0, 1, 0], [], []>} : vector<8x16xf32>, vector<8x16xf32>, vector<8x8xf32> -> vector<8x8xf32>
    %cst_287 = arith.constant 0.000000e+00 : f32
    "tpu.trace_stop"() : () -> ()
    %395 = vector.broadcast %cst_287 : f32 to vector<1x8xf32>
    %396 = arith.cmpf oeq, %7, %395 : vector<1x8xf32>
    %cst_288 = arith.constant -1.000000e+09 : f32
    %397 = vector.shape_cast %396 : vector<1x8xi1> to vector<1x8xi1>
    %398 = vector.broadcast %397 : vector<1x8xi1> to vector<8x8xi1>
    %399 = vector.broadcast %cst_288 : f32 to vector<8x8xf32>
    %400 = arith.select %398, %399, %394 : vector<8x8xi1>, vector<8x8xf32>
    %cst_289 = arith.constant dense<0xFF800000> : vector<8xf32>
    %401 = vector.multi_reduction <maximumf>, %400, %cst_289 [1] : vector<8x8xf32> to vector<8xf32>
    %402 = vector.shape_cast %401 : vector<8xf32> to vector<8x1xf32>
    %403 = vector.broadcast %402 : vector<8x1xf32> to vector<8x8xf32>
    %404 = arith.subf %400, %403 : vector<8x8xf32>
    %405 = math.exp %404 : vector<8x8xf32>
    %cst_290 = arith.constant dense<0.000000e+00> : vector<8xf32>
    %406 = vector.multi_reduction <add>, %405, %cst_290 [1] : vector<8x8xf32> to vector<8xf32>
    %407 = vector.shape_cast %406 : vector<8xf32> to vector<8x1xf32>
    %408 = tpu.reciprocal %407 {approx = true} : vector<8x1xf32> -> vector<8x1xf32>
    %409 = vector.broadcast %408 : vector<8x1xf32> to vector<8x8xf32>
    %410 = arith.mulf %405, %409 : vector<8x8xf32>
    %cst_291 = arith.constant dense<0.000000e+00> : vector<8x16xf32>
    %411 = tpu.matmul %410, %393, %cst_291 {dimension_numbers = #tpu.dot_dimension_numbers<[1], [0], [0], [1], [0, 0, 1, 1], [], []>} : vector<8x8xf32>, vector<8x16xf32>, vector<8x16xf32> -> vector<8x16xf32>
    %c1_292 = arith.constant 1 : index
    %c1_293 = arith.constant 1 : index
    %c0_294 = arith.constant 0 : index
    %c0_295 = arith.constant 0 : index
    %412 = vector.load %arg16[%c1_292, %c1_293, %c0_294, %c0_295] : memref<2x2x16x32xf32, #tpu.memory_space<vmem>>, vector<1x1x16x32xf32>
    %413 = vector.shape_cast %412 : vector<1x1x16x32xf32> to vector<16x32xf32>
    %cst_296 = arith.constant dense<0.000000e+00> : vector<8x32xf32>
    %414 = tpu.matmul %411, %413, %cst_296 {dimension_numbers = #tpu.dot_dimension_numbers<[1], [0], [0], [1], [0, 0, 1, 1], [], []>} : vector<8x16xf32>, vector<16x32xf32>, vector<8x32xf32> -> vector<8x32xf32>
    %415 = arith.addf %382, %414 : vector<8x32xf32>
    %416 = arith.addf %415, %348 : vector<8x32xf32>
    %c1_297 = arith.constant 1 : index
    %c0_298 = arith.constant 0 : index
    %c0_299 = arith.constant 0 : index
    %417 = vector.load %arg17[%c1_297, %c0_298, %c0_299] : memref<2x1x32xf32, #tpu.memory_space<vmem>>, vector<1x1x32xf32>
    %418 = vector.shape_cast %417 : vector<1x1x32xf32> to vector<1x32xf32>
    %c1_300 = arith.constant 1 : index
    %c0_301 = arith.constant 0 : index
    %c0_302 = arith.constant 0 : index
    %419 = vector.load %arg18[%c1_300, %c0_301, %c0_302] : memref<2x1x32xf32, #tpu.memory_space<vmem>>, vector<1x1x32xf32>
    %420 = vector.shape_cast %419 : vector<1x1x32xf32> to vector<1x32xf32>
    %cst_303 = arith.constant dense<0.000000e+00> : vector<8xf32>
    %421 = vector.multi_reduction <add>, %416, %cst_303 [1] : vector<8x32xf32> to vector<8xf32>
    %422 = vector.shape_cast %421 : vector<8xf32> to vector<8x1xf32>
    %cst_304 = arith.constant 3.200000e+01 : f32
    %423 = vector.broadcast %cst_304 : f32 to vector<8x1xf32>
    %424 = arith.divf %422, %423 : vector<8x1xf32>
    %425 = vector.broadcast %424 : vector<8x1xf32> to vector<8x32xf32>
    %426 = arith.subf %416, %425 : vector<8x32xf32>
    %427 = arith.mulf %426, %426 : vector<8x32xf32>
    %cst_305 = arith.constant dense<0.000000e+00> : vector<8xf32>
    %428 = vector.multi_reduction <add>, %427, %cst_305 [1] : vector<8x32xf32> to vector<8xf32>
    %429 = vector.shape_cast %428 : vector<8xf32> to vector<8x1xf32>
    %cst_306 = arith.constant 3.200000e+01 : f32
    %430 = vector.broadcast %cst_306 : f32 to vector<8x1xf32>
    %431 = arith.divf %429, %430 : vector<8x1xf32>
    %432 = vector.broadcast %424 : vector<8x1xf32> to vector<8x32xf32>
    %433 = arith.subf %416, %432 : vector<8x32xf32>
    %cst_307 = arith.constant 9.99999997E-7 : f32
    %434 = vector.broadcast %cst_307 : f32 to vector<8x1xf32>
    %435 = arith.addf %431, %434 : vector<8x1xf32>
    %436 = math.rsqrt %435 : vector<8x1xf32>
    %437 = vector.broadcast %436 : vector<8x1xf32> to vector<8x32xf32>
    %438 = arith.mulf %433, %437 : vector<8x32xf32>
    %439 = vector.broadcast %418 : vector<1x32xf32> to vector<8x32xf32>
    %440 = arith.mulf %438, %439 : vector<8x32xf32>
    %441 = vector.broadcast %420 : vector<1x32xf32> to vector<8x32xf32>
    %442 = arith.addf %440, %441 : vector<8x32xf32>
    %c1_308 = arith.constant 1 : index
    %c0_309 = arith.constant 0 : index
    %c0_310 = arith.constant 0 : index
    %443 = vector.load %arg19[%c1_308, %c0_309, %c0_310] : memref<2x32x64xf32, #tpu.memory_space<vmem>>, vector<1x32x64xf32>
    %444 = vector.shape_cast %443 : vector<1x32x64xf32> to vector<32x64xf32>
    %cst_311 = arith.constant dense<0.000000e+00> : vector<8x64xf32>
    %445 = tpu.matmul %442, %444, %cst_311 {dimension_numbers = #tpu.dot_dimension_numbers<[1], [0], [0], [1], [0, 0, 1, 1], [], []>} : vector<8x32xf32>, vector<32x64xf32>, vector<8x64xf32> -> vector<8x64xf32>
    %c1_312 = arith.constant 1 : index
    %c0_313 = arith.constant 0 : index
    %c0_314 = arith.constant 0 : index
    %446 = vector.load %arg20[%c1_312, %c0_313, %c0_314] : memref<2x1x64xf32, #tpu.memory_space<vmem>>, vector<1x1x64xf32>
    %447 = vector.shape_cast %446 : vector<1x1x64xf32> to vector<1x64xf32>
    %448 = vector.broadcast %447 : vector<1x64xf32> to vector<8x64xf32>
    %449 = arith.addf %445, %448 : vector<8x64xf32>
    %cst_315 = arith.constant 0.000000e+00 : f32
    %450 = vector.broadcast %cst_315 : f32 to vector<8x64xf32>
    %451 = arith.maximumf %449, %450 : vector<8x64xf32>
    %c1_316 = arith.constant 1 : index
    %c0_317 = arith.constant 0 : index
    %c0_318 = arith.constant 0 : index
    %452 = vector.load %arg21[%c1_316, %c0_317, %c0_318] : memref<2x64x32xf32, #tpu.memory_space<vmem>>, vector<1x64x32xf32>
    %453 = vector.shape_cast %452 : vector<1x64x32xf32> to vector<64x32xf32>
    %cst_319 = arith.constant dense<0.000000e+00> : vector<8x32xf32>
    %454 = tpu.matmul %451, %453, %cst_319 {dimension_numbers = #tpu.dot_dimension_numbers<[1], [0], [0], [1], [0, 0, 1, 1], [], []>} : vector<8x64xf32>, vector<64x32xf32>, vector<8x32xf32> -> vector<8x32xf32>
    %c1_320 = arith.constant 1 : index
    %c0_321 = arith.constant 0 : index
    %c0_322 = arith.constant 0 : index
    %455 = vector.load %arg22[%c1_320, %c0_321, %c0_322] : memref<2x1x32xf32, #tpu.memory_space<vmem>>, vector<1x1x32xf32>
    %456 = vector.shape_cast %455 : vector<1x1x32xf32> to vector<1x32xf32>
    %457 = vector.broadcast %456 : vector<1x32xf32> to vector<8x32xf32>
    %458 = arith.addf %454, %457 : vector<8x32xf32>
    %459 = arith.addf %458, %442 : vector<8x32xf32>
    %c1_323 = arith.constant 1 : index
    %c0_324 = arith.constant 0 : index
    %c0_325 = arith.constant 0 : index
    %460 = vector.load %arg23[%c1_323, %c0_324, %c0_325] : memref<2x1x32xf32, #tpu.memory_space<vmem>>, vector<1x1x32xf32>
    %461 = vector.shape_cast %460 : vector<1x1x32xf32> to vector<1x32xf32>
    %c1_326 = arith.constant 1 : index
    %c0_327 = arith.constant 0 : index
    %c0_328 = arith.constant 0 : index
    %462 = vector.load %arg24[%c1_326, %c0_327, %c0_328] : memref<2x1x32xf32, #tpu.memory_space<vmem>>, vector<1x1x32xf32>
    %463 = vector.shape_cast %462 : vector<1x1x32xf32> to vector<1x32xf32>
    %cst_329 = arith.constant dense<0.000000e+00> : vector<8xf32>
    %464 = vector.multi_reduction <add>, %459, %cst_329 [1] : vector<8x32xf32> to vector<8xf32>
    %465 = vector.shape_cast %464 : vector<8xf32> to vector<8x1xf32>
    %cst_330 = arith.constant 3.200000e+01 : f32
    %466 = vector.broadcast %cst_330 : f32 to vector<8x1xf32>
    %467 = arith.divf %465, %466 : vector<8x1xf32>
    %468 = vector.broadcast %467 : vector<8x1xf32> to vector<8x32xf32>
    %469 = arith.subf %459, %468 : vector<8x32xf32>
    %470 = arith.mulf %469, %469 : vector<8x32xf32>
    %cst_331 = arith.constant dense<0.000000e+00> : vector<8xf32>
    %471 = vector.multi_reduction <add>, %470, %cst_331 [1] : vector<8x32xf32> to vector<8xf32>
    %472 = vector.shape_cast %471 : vector<8xf32> to vector<8x1xf32>
    %cst_332 = arith.constant 3.200000e+01 : f32
    %473 = vector.broadcast %cst_332 : f32 to vector<8x1xf32>
    %474 = arith.divf %472, %473 : vector<8x1xf32>
    %475 = vector.broadcast %467 : vector<8x1xf32> to vector<8x32xf32>
    %476 = arith.subf %459, %475 : vector<8x32xf32>
    %cst_333 = arith.constant 9.99999997E-7 : f32
    %477 = vector.broadcast %cst_333 : f32 to vector<8x1xf32>
    %478 = arith.addf %474, %477 : vector<8x1xf32>
    %479 = math.rsqrt %478 : vector<8x1xf32>
    %480 = vector.broadcast %479 : vector<8x1xf32> to vector<8x32xf32>
    %481 = arith.mulf %476, %480 : vector<8x32xf32>
    %482 = vector.broadcast %461 : vector<1x32xf32> to vector<8x32xf32>
    %483 = arith.mulf %481, %482 : vector<8x32xf32>
    %484 = vector.broadcast %463 : vector<1x32xf32> to vector<8x32xf32>
    %485 = arith.addf %483, %484 : vector<8x32xf32>
    %c0_334 = arith.constant 0 : index
    %c0_335 = arith.constant 0 : index
    %c0_336 = arith.constant 0 : index
    %486 = vector.load %arg25[%c0_334, %c0_335, %c0_336] : memref<1x8x32xf32, #tpu.memory_space<vmem>>, vector<1x8x32xf32>
    %487 = vector.shape_cast %486 : vector<1x8x32xf32> to vector<8x32xf32>
    %488 = vector.shape_cast %485 : vector<8x32xf32> to vector<1x8x32xf32>
    tpu.vector_store %arg25[%c0_334, %c0_335, %c0_336], %488 {strides = array<i32>} : memref<1x8x32xf32, #tpu.memory_space<vmem>>, vector<1x8x32xf32>,
    return
  }
  func.func @transform_0(%arg0: i32) -> (i32, i32, i32) {
    %c0_i32 = arith.constant 0 : i32
    %c0_i32_0 = arith.constant 0 : i32
    %c0_i32_1 = arith.constant 0 : i32
    return %arg0, %c0_i32, %c0_i32_0 : i32, i32, i32
  }
  func.func @transform_1(%arg0: i32) -> (i32, i32, i32) {
    %c0_i32 = arith.constant 0 : i32
    %c0_i32_0 = arith.constant 0 : i32
    %c0_i32_1 = arith.constant 0 : i32
    return %arg0, %c0_i32, %c0_i32_0 : i32, i32, i32
  }
  func.func @transform_2(%arg0: i32) -> (i32, i32, i32) {
    %c0_i32 = arith.constant 0 : i32
    %c0_i32_0 = arith.constant 0 : i32
    %c0_i32_1 = arith.constant 0 : i32
    return %arg0, %c0_i32, %c0_i32_0 : i32, i32, i32
  }
  func.func @transform_3(%arg0: i32) -> (i32, i32, i32) {
    %c0_i32 = arith.constant 0 : i32
    %c0_i32_0 = arith.constant 0 : i32
    %c0_i32_1 = arith.constant 0 : i32
    return %arg0, %c0_i32, %c0_i32_0 : i32, i32, i32
  }
  func.func @transform_4(%arg0: i32) -> (i32, i32) {
    %c0_i32 = arith.constant 0 : i32
    %c0_i32_0 = arith.constant 0 : i32
    %c0_i32_1 = arith.constant 0 : i32
    return %c0_i32, %c0_i32_0 : i32, i32
  }
  func.func @transform_5(%arg0: i32) -> (i32, i32) {
    %c0_i32 = arith.constant 0 : i32
    %c0_i32_0 = arith.constant 0 : i32
    %c0_i32_1 = arith.constant 0 : i32
    return %c0_i32, %c0_i32_0 : i32, i32
  }
  func.func @transform_6(%arg0: i32) -> (i32, i32, i32, i32) {
    %c0_i32 = arith.constant 0 : i32
    %c0_i32_0 = arith.constant 0 : i32
    %c0_i32_1 = arith.constant 0 : i32
    %c0_i32_2 = arith.constant 0 : i32
    %c0_i32_3 = arith.constant 0 : i32
    return %c0_i32, %c0_i32_0, %c0_i32_1, %c0_i32_2 : i32, i32, i32, i32
  }
  func.func @transform_7(%arg0: i32) -> (i32, i32, i32, i32) {
    %c0_i32 = arith.constant 0 : i32
    %c0_i32_0 = arith.constant 0 : i32
    %c0_i32_1 = arith.constant 0 : i32
    %c0_i32_2 = arith.constant 0 : i32
    %c0_i32_3 = arith.constant 0 : i32
    return %c0_i32, %c0_i32_0, %c0_i32_1, %c0_i32_2 : i32, i32, i32, i32
  }
  func.func @transform_8(%arg0: i32) -> (i32, i32, i32, i32) {
    %c0_i32 = arith.constant 0 : i32
    %c0_i32_0 = arith.constant 0 : i32
    %c0_i32_1 = arith.constant 0 : i32
    %c0_i32_2 = arith.constant 0 : i32
    %c0_i32_3 = arith.constant 0 : i32
    return %c0_i32, %c0_i32_0, %c0_i32_1, %c0_i32_2 : i32, i32, i32, i32
  }
  func.func @transform_9(%arg0: i32) -> (i32, i32, i32, i32) {
    %c0_i32 = arith.constant 0 : i32
    %c0_i32_0 = arith.constant 0 : i32
    %c0_i32_1 = arith.constant 0 : i32
    %c0_i32_2 = arith.constant 0 : i32
    %c0_i32_3 = arith.constant 0 : i32
    return %c0_i32, %c0_i32_0, %c0_i32_1, %c0_i32_2 : i32, i32, i32, i32
  }
  func.func @transform_10(%arg0: i32) -> (i32, i32, i32) {
    %c0_i32 = arith.constant 0 : i32
    %c0_i32_0 = arith.constant 0 : i32
    %c0_i32_1 = arith.constant 0 : i32
    %c0_i32_2 = arith.constant 0 : i32
    return %c0_i32, %c0_i32_0, %c0_i32_1 : i32, i32, i32
  }
  func.func @transform_11(%arg0: i32) -> (i32, i32, i32) {
    %c0_i32 = arith.constant 0 : i32
    %c0_i32_0 = arith.constant 0 : i32
    %c0_i32_1 = arith.constant 0 : i32
    %c0_i32_2 = arith.constant 0 : i32
    return %c0_i32, %c0_i32_0, %c0_i32_1 : i32, i32, i32
  }
  func.func @transform_12(%arg0: i32) -> (i32, i32, i32, i32) {
    %c0_i32 = arith.constant 0 : i32
    %c0_i32_0 = arith.constant 0 : i32
    %c0_i32_1 = arith.constant 0 : i32
    %c0_i32_2 = arith.constant 0 : i32
    %c0_i32_3 = arith.constant 0 : i32
    return %c0_i32, %c0_i32_0, %c0_i32_1, %c0_i32_2 : i32, i32, i32, i32
  }
  func.func @transform_13(%arg0: i32) -> (i32, i32, i32, i32) {
    %c0_i32 = arith.constant 0 : i32
    %c0_i32_0 = arith.constant 0 : i32
    %c0_i32_1 = arith.constant 0 : i32
    %c0_i32_2 = arith.constant 0 : i32
    %c0_i32_3 = arith.constant 0 : i32
    return %c0_i32, %c0_i32_0, %c0_i32_1, %c0_i32_2 : i32, i32, i32, i32
  }
  func.func @transform_14(%arg0: i32) -> (i32, i32, i32, i32) {
    %c0_i32 = arith.constant 0 : i32
    %c0_i32_0 = arith.constant 0 : i32
    %c0_i32_1 = arith.constant 0 : i32
    %c0_i32_2 = arith.constant 0 : i32
    %c0_i32_3 = arith.constant 0 : i32
    return %c0_i32, %c0_i32_0, %c0_i32_1, %c0_i32_2 : i32, i32, i32, i32
  }
  func.func @transform_15(%arg0: i32) -> (i32, i32, i32, i32) {
    %c0_i32 = arith.constant 0 : i32
    %c0_i32_0 = arith.constant 0 : i32
    %c0_i32_1 = arith.constant 0 : i32
    %c0_i32_2 = arith.constant 0 : i32
    %c0_i32_3 = arith.constant 0 : i32
    return %c0_i32, %c0_i32_0, %c0_i32_1, %c0_i32_2 : i32, i32, i32, i32
  }
  func.func @transform_16(%arg0: i32) -> (i32, i32, i32) {
    %c0_i32 = arith.constant 0 : i32
    %c0_i32_0 = arith.constant 0 : i32
    %c0_i32_1 = arith.constant 0 : i32
    %c0_i32_2 = arith.constant 0 : i32
    return %c0_i32, %c0_i32_0, %c0_i32_1 : i32, i32, i32
  }
  func.func @transform_17(%arg0: i32) -> (i32, i32, i32) {
    %c0_i32 = arith.constant 0 : i32
    %c0_i32_0 = arith.constant 0 : i32
    %c0_i32_1 = arith.constant 0 : i32
    %c0_i32_2 = arith.constant 0 : i32
    return %c0_i32, %c0_i32_0, %c0_i32_1 : i32, i32, i32
  }
  func.func @transform_18(%arg0: i32) -> (i32, i32, i32) {
    %c0_i32 = arith.constant 0 : i32
    %c0_i32_0 = arith.constant 0 : i32
    %c0_i32_1 = arith.constant 0 : i32
    %c0_i32_2 = arith.constant 0 : i32
    return %c0_i32, %c0_i32_0, %c0_i32_1 : i32, i32, i32
  }
  func.func @transform_19(%arg0: i32) -> (i32, i32, i32) {
    %c0_i32 = arith.constant 0 : i32
    %c0_i32_0 = arith.constant 0 : i32
    %c0_i32_1 = arith.constant 0 : i32
    %c0_i32_2 = arith.constant 0 : i32
    return %c0_i32, %c0_i32_0, %c0_i32_1 : i32, i32, i32
  }
  func.func @transform_20(%arg0: i32) -> (i32, i32, i32) {
    %c0_i32 = arith.constant 0 : i32
    %c0_i32_0 = arith.constant 0 : i32
    %c0_i32_1 = arith.constant 0 : i32
    %c0_i32_2 = arith.constant 0 : i32
    return %c0_i32, %c0_i32_0, %c0_i32_1 : i32, i32, i32
  }
  func.func @transform_21(%arg0: i32) -> (i32, i32, i32) {
    %c0_i32 = arith.constant 0 : i32
    %c0_i32_0 = arith.constant 0 : i32
    %c0_i32_1 = arith.constant 0 : i32
    %c0_i32_2 = arith.constant 0 : i32
    return %c0_i32, %c0_i32_0, %c0_i32_1 : i32, i32, i32
  }
  func.func @transform_22(%arg0: i32) -> (i32, i32, i32) {
    %c0_i32 = arith.constant 0 : i32
    %c0_i32_0 = arith.constant 0 : i32
    %c0_i32_1 = arith.constant 0 : i32
    %c0_i32_2 = arith.constant 0 : i32
    return %c0_i32, %c0_i32_0, %c0_i32_1 : i32, i32, i32
  }
  func.func @transform_23(%arg0: i32) -> (i32, i32, i32) {
    %c0_i32 = arith.constant 0 : i32
    %c0_i32_0 = arith.constant 0 : i32
    %c0_i32_1 = arith.constant 0 : i32
    %c0_i32_2 = arith.constant 0 : i32
    return %c0_i32, %c0_i32_0, %c0_i32_1 : i32, i32, i32
  }
  func.func @transform_24(%arg0: i32) -> (i32, i32, i32) {
    %c0_i32 = arith.constant 0 : i32
    %c0_i32_0 = arith.constant 0 : i32
    %c0_i32_1 = arith.constant 0 : i32
    return %arg0, %c0_i32, %c0_i32_0 : i32, i32, i32
  }
}

</mosaic_0001>

<bundles_post_ra>
// kernel: decoder_forward.2
= control target key start
LH: loop header
LB: loop body
LE: loop exit
PB: predicated region body
PF: predicated region fallthrough
CT: control target
= control target key end

     0   :  { %7 = vsyncpa [#allocation3], 0  ;;  %s113_s12 = smov [#allocation2]   ;;  %s138_s0 = inlined_call_operand.vmem [shape: f32[2,8], index: 0, kind: input, shape index: {}]   ;;  %s139_s1 = inlined_call_operand.hbm [shape: f32[8,256], index: 1, kind: input, shape index: {}]   ;;  %s140_s2 = inlined_call_operand.vmem [shape: f32[2,256], index: 2, kind: output, shape index: {}]  }
   0x1   :  { %s15_s11 = sshll.u32 %s139_s1, 4  ;;  %s17_s13 = sshll.u32 %s113_s12, 4  ;;  %s16_s11 = int_to_ptr.hbm [resolvable:$true] %s15_s11  ;;  %s18_s13 = int_to_ptr.vmem [resolvable:$true] %s17_s13 }
   0x2   :  { %20 = dma.hbm_to_vmem [thread:$0]  %s16_s11, 256, %s18_s13, [#allocation3]  }
   0x3   :  { %111 = dma.done.wait [#allocation3], 256  }
   0x4   :  { %112 = vsyncadd [#allocation3], 4294967040  ;;  %vm28_vm0 = vcmask 64512   ;;  %v27_v0 = vld [vmem:[#allocation2 + $0x8] sm:$0xff]  ;;  %v25_v1 = vld [vmem:[%s138_s0] sm:$0x3] }
   0x5   :  { %v26_v2 = vld [vmem:[#allocation2] sm:$0xff]  ;;  %67 = vmatpush.msra.mxu1 %v27_v0  ;;  %vm75_vm1 = vcmask 1041408  }
   0x6   :  { %47 = vmatpush.msra.mxu0 %v26_v2  ;;  %85 = vmatmul.msk.f32.vlgmr.msra.gmra.mxu1 %vm28_vm0, %v25_v1 }
   0x7   :  { %84 = vmatmul.msk.f32.vlgmr.msra.gmra.mxu0 %vm28_vm0, %v25_v1 }
  0x83   :  { %v69_v3 = vpop.f32.mrf.mxu1 }
  0x84   :  { %v49_v4 = vpop.f32.mrf.mxu0  ;;  %v74_v5 = vrot.slane %v69_v3, 6 }
  0x86   :  { %v76_v6 = vsel %vm75_vm1, %v49_v4, %v74_v5 }
  0x87   :  { %78 = vst [vmem:[%s140_s2] sm:$0xf] %v76_v6 }
  0x88   :  { %83 = vsyncpa [#allocation3], 1 }

// kernel: decoder_forward.3
= control target key start
LH: loop header
LB: loop body
LE: loop exit
PB: predicated region body
PF: predicated region fallthrough
CT: control target
= control target key end

     0   :  { %s3802_s0 = inlined_call_operand.vmem [shape: f32[2,8,32], index: 0, kind: input, shape index: {}]   ;;  %s3803_s1 = inlined_call_operand.vmem [shape: f32[2,8,32], index: 1, kind: input, shape index: {}]   ;;  %s3804_s2 = inlined_call_operand.vmem [shape: f32[2,8,8], index: 2, kind: input, shape index: {}]   ;;  %s3805_s3 = inlined_call_operand.vmem [shape: f32[2,1,8], index: 3, kind: input, shape index: {}]   ;;  %s3806_s4 = inlined_call_operand.vmem [shape: f32[1,32], index: 4, kind: input, shape index: {}]   ;;  %s3807_s5 = inlined_call_operand.vmem [shape: f32[1,32], index: 5, kind: input, shape index: {}]   ;;  %s3808_s6 = inlined_call_operand.vmem [shape: f32[2,2,32,16], index: 6, kind: input, shape index: {}]   ;;  %s3809_s7 = inlined_call_operand.vmem [shape: f32[2,2,32,16], index: 7, kind: input, shape index: {}]   ;;  %s3810_s8 = inlined_call_operand.vmem [shape: f32[2,2,32,16], index: 8, kind: input, shape index: {}]   ;;  %s3811_s9 = inlined_call_operand.vmem [shape: f32[2,2,16,32], index: 9, kind: input, shape index: {}]   ;;  %s3812_s10 = inlined_call_operand.vmem [shape: f32[2,1,32], index: 10, kind: input, shape index: {}]   ;;  %s3813_s11 = inlined_call_operand.vmem [shape: f32[2,1,32], index: 11, kind: input, shape index: {}]   ;;  %s3814_s12 = inlined_call_operand.vmem [shape: f32[2,2,32,16], index: 12, kind: input, shape index: {}]   ;;  %s3815_s13 = inlined_call_operand.vmem [shape: f32[2,2,32,16], index: 13, kind: input, shape index: {}]   ;;  %s3816_s14 = inlined_call_operand.vmem [shape: f32[2,2,32,16], index: 14, kind: input, shape index: {}]   ;;  %s3817_s15 = inlined_call_operand.vmem [shape: f32[2,2,16,32], index: 15, kind: input, shape index: {}]   ;;  %s3818_s16 = inlined_call_operand.vmem [shape: f32[2,1,32], index: 16, kind: input, shape index: {}]   ;;  %s3819_s17 = inlined_call_operand.vmem [shape: f32[2,1,32], index: 17, kind: input, shape index: {}]   ;;  %s3820_s18 = inlined_call_operand.vmem [shape: f32[2,32,64], index: 18, kind: input, shape index: {}]   ;;  %s3821_s19 = inlined_call_operand.vmem [shape: f32[2,1,64], index: 19, kind: input, shape index: {}]   ;;  %s3822_s20 = inlined_call_operand.vmem [shape: f32[2,64,32], index: 20, kind: input, shape index: {}]   ;;  %s3823_s21 = inlined_call_operand.vmem [shape: f32[2,1,32], index: 21, kind: input, shape index: {}]   ;;  %s3824_s22 = inlined_call_operand.vmem [shape: f32[2,1,32], index: 22, kind: input, shape index: {}]   ;;  %s3825_s23 = inlined_call_operand.vmem [shape: f32[2,1,32], index: 23, kind: input, shape index: {}]   ;;  %s3826_s24 = inlined_call_operand.hbm [shape: f32[2,8,32], index: 24, kind: output, shape index: {}]  }
   0x1   :  { %3844 = sst [smem:[#allocation14_spill]] %s3802_s0 }
   0x2   :  { %3845 = sst [smem:[#allocation15_spill]] %s3803_s1 }
   0x3   :  { %3846 = sst [smem:[#allocation16_spill]] %s3804_s2 }
   0x4   :  { %3847 = sst [smem:[#allocation17_spill]] %s3805_s3 }
   0x5   :  { %3848 = sst [smem:[#allocation18_spill]] %s3806_s4 }
   0x6   :  { %3849 = sst [smem:[#allocation19_spill]] %s3807_s5 }
   0x7   :  { %3850 = sst [smem:[#allocation20_spill]] %s3808_s6 }
   0x8   :  { %3851 = sst [smem:[#allocation21_spill]] %s3809_s7 }
   0x9   :  { %3852 = sst [smem:[#allocation22_spill]] %s3810_s8 }
   0xa   :  { %3853 = sst [smem:[#allocation23_spill]] %s3811_s9 }
   0xb   :  { %3854 = sst [smem:[#allocation24_spill]] %s3825_s23 }
   0xc   :  { %3855 = sst [smem:[#allocation25_spill]] %s3826_s24 }
   0xd   :  { %29 = vsyncpa [#allocation3], 0 }
   0xe   :  { %31 = vsyncpa [#allocation3 + $0x1], 0  ;;  %s3069_s5 = smov 0   ;;  %s3071_s26 = smov 0  }
   0xf   :  { %s3073_s27 = smov 0   ;;  %s3075_s28 = smov 0  }
  0x10 LB: > { %3856 = sst [smem:[#allocation5_spill]] %s2928_s5  ;;  %s3090_s6 = sadd.s32 4294967295, %s2940_s28   ;;  %s2940_s28 = sphi %s3075_s28, %s3891_s28   ;;  %s2936_s27 = sphi %s3073_s27, %s3894_s27   ;;  %s2932_s26 = sphi %s3071_s26, %s3893_s26   ;;  %s2928_s5 = sphi %s3069_s5, %s3892_s5  }
  0x11   : > { %3857 = sst [smem:[#allocation6_spill]] %s2932_s26  ;;  %s2595_s2 = sadd.s32 4294967294, %s2940_s28  }
  0x12   : > { %3858 = sst [smem:[#allocation7_spill]] %s2936_s27  ;;  %s3094_s29 = sadd.s32 1, %s2940_s28  }
  0x13   : > { %3859 = sst [smem:[#allocation8_spill]] %s2940_s28  ;;  %s568_s0 = sadd.s32 1, %s2936_s27 }
  0x14   : > { %3860 = sst [smem:[#allocation9_spill]] %s3090_s6  ;;  %s565_s7 = ssub.s32 %s2940_s28, %s3094_s29 }
  0x15   : > { %3861 = sst [smem:[#allocation10_spill]] %s3094_s29  ;;  %p578_p0 = scmp.ne.s32.totalorder %s2936_s27, %s2932_s26 }
  0x16   : > { %p566_p1 = scmp.eq.s32.totalorder %s565_s7, 0  ;;  %p579_p2 = scmp.eq.s32.totalorder %s3090_s6, 1 }
  0x17   : > { %p584_p3 = scmp.ne.s32.totalorder %s2932_s26, %s2928_s5  ;;  %p585_p4 = scmp.eq.s32.totalorder %s2595_s2, 1 }
  0x18   : > { %s3105_s30 = scalar_select %p566_p1, %s2936_s27, %s568_s0  }
  0x19   : > { %p3107_p5 = por %p579_p2, %p578_p0  ;;  %p3111_p6 = por %p585_p4, %p584_p3 }
  0x1a   : > { %3862 = sst [smem:[#allocation11_spill]] %s3105_s30  ;;  %p2598_p7 = scmp.ge.s32.totalorder %s2940_s28, 1 }
  0x1b   : > { %s3863_s3 = scalar_select %p3107_p5, 1, 0 }
  0x1c   : > { %s3865_s25 = scalar_select %p3111_p6, 1, 0 }
  0x1d   : > { %3864 = sst [smem:[#allocation12_spill]] %s3863_s3  ;;  %p690_p8 = scmp.lt.s32.totalorder %s2940_s28, 3 }
  0x1e   : > { %3866 = sst [smem:[#allocation13_spill]] %s3865_s25 }
  0x1f   : > { %p691_p9 = pnand %p2598_p7, %p690_p8 }
  0x20   : > { %p766_p10 = scmp.lt.s32.totalorder (!%p691_p9), %s3090_s6, 1  ;;  %s3867_s0 = sld [smem:[#allocation14_spill]] (!%p691_p9) }
  0x21   : > { %694 = sbr.rel (%p691_p9) target bundleno = 7138 (0x1be2), region = 116  ;;  %s3869_s27 = sld [smem:[#allocation21_spill]] (!%p691_p9) }
  0x22   : > { %s3871_s28 = sld [smem:[#allocation22_spill]] (!%p691_p9) }
  0x23   : > { %s3873_s23 = sld [smem:[#allocation18_spill]] (!%p691_p9) }
  0x24   : > { %s3875_s25 = sld [smem:[#allocation16_spill]] (!%p691_p9) }
  0x25   : > { %s3876_s9 = sld [smem:[#allocation23_spill]] (!%p691_p9) }
  0x26   : > { %s3119_s8 = scalar_select %p766_p10, %s3090_s6, 1  ;;  %vm787_vm0 = vcmask 261120   ;;  %v2942_v2 = vmov 32.0   ;;  %vm901_vm5 = vcmask 130048   ;;  %vm930_vm7 = vcmask 64512  }
  0x27   : > { %2830 = vrcp.f32 %v2942_v2  ;;  %s3870_s29 = smov %s3869_s27  ;;  %v856_v15 = vld [vmem:[%s3869_s27 + $0x18] sm:$0xff]  ;;  %s3877_s1 = sld [smem:[#allocation15_spill]] }
  0x28   : > { %s3122_s4 = sshll.u32 %s3119_s8, 3  ;;  %s3872_s3 = smov %s3871_s28  ;;  %v880_v16 = vld [vmem:[%s3871_s28 + $0x18] sm:$0xff]  ;;  %869 = vmatpush.msra.mxu1 %v856_v15  ;;  %v855_v18 = vld [vmem:[%s3870_s29 + $0x10] sm:$0xff]  ;;  %v854_v21 = vld [vmem:[%s3870_s29 + $0x8] sm:$0xff] }
  0x29   : > { %s769_s7 = scalar_lea.vmem %s3867_s0, %s3122_s4  ;;  %s3868_s0 = sld [smem:[#allocation20_spill]]  ;;  %893 = vmatpush.msra.mxu2 %v880_v16  ;;  %v879_v19 = vld [vmem:[%s3872_s3 + $0x10] sm:$0xff]  ;;  %v878_v22 = vld [vmem:[%s3872_s3 + $0x8] sm:$0xff]  ;;  %v853_v24 = vld [vmem:[%s3870_s29] sm:$0xff] }
  0x2a   : > { %v781_v0 = vld [vmem:[%s769_s7] sm:$0xff]  ;;  %870 = vmatpush.msra.mxu1 %v855_v18  ;;  %v2617_v26 = vld [vmem:[%s3870_s29 + $0x38] sm:$0xff]  ;;  %v2616_v28 = vld [vmem:[%s3870_s29 + $0x30] sm:$0xff]  ;;  %s3874_s7 = sld [smem:[#allocation19_spill]] }
  0x2b   : > { %v788_v1 = vsel %vm787_vm0, %v781_v0, 0.0  ;;  %894 = vmatpush.msra.mxu2 %v879_v19  ;;  %v877_v25 = vld [vmem:[%s3872_s3] sm:$0xff]  ;;  %v2622_v27 = vld [vmem:[%s3872_s3 + $0x38] sm:$0xff]  ;;  %v2621_v29 = vld [vmem:[%s3872_s3 + $0x30] sm:$0xff]  ;;  %s3878_s28 = sld [smem:[#allocation17_spill]] }
  0x2c   : > { %789 = vadd.xlane.f32.xlu0 %v788_v1  ;;  %871 = vmatpush.msra.mxu1 %v854_v21  ;;  %v2615_v31 = vld [vmem:[%s3870_s29 + $0x28] sm:$0xff]  ;;  %v2614_v34 = vld [vmem:[%s3870_s29 + $0x20] sm:$0xff]  ;;  %v2628_v21 = vld [vmem:[%s3876_s9 + $0x18] sm:$0xff]  ;;  %s3881_s5 = sld [smem:[#allocation24_spill]] }
  0x2d   : > { %v2831_v3 = vpop.eup %2830  ;;  %895 = vmatpush.msra.mxu2 %v878_v22  ;;  %v2620_v32 = vld [vmem:[%s3872_s3 + $0x28] sm:$0xff]  ;;  %v2619_v35 = vld [vmem:[%s3872_s3 + $0x20] sm:$0xff]  ;;  %s773_s2 = scalar_lea.vmem %s3877_s1, %s3122_s4  ;;  %s3885_s27 = sld [smem:[#allocation25_spill]] }
  0x2e   : > { %v792_v4 = vmul.f32 32.0, %v2831_v3  ;;  %vm796_vm1 = vweird.f32 %v2831_v3  ;;  %872 = vmatpush.msra.mxu1 %v853_v24  ;;  %v2812_v43 = vld [vmem:[%s3873_s23] ss:$0 sm:$0xff] }
  0x2f   : > { %v828_v14 = vld [vmem:[%s3868_s0 + $0x18] sm:$0xff]  ;;  %v827_v17 = vld [vmem:[%s3868_s0 + $0x10] sm:$0xff]  ;;  %v826_v20 = vld [vmem:[%s3868_s0 + $0x8] sm:$0xff]  ;;  %896 = vmatpush.msra.mxu2 %v877_v25 }
  0x30   : > { %v793_v5 = vsub.f32 1.0, %v792_v4  ;;  %844 = vmatpush.msra.mxu0 %v828_v14  ;;  %v825_v23 = vld [vmem:[%s3868_s0] sm:$0xff]  ;;  %1010 = vmatpush.msrb.mxu1 %v2617_v26  ;;  %v2612_v49 = vld [vmem:[%s3868_s0 + $0x38] sm:$0xff]  ;;  %v2611_v53 = vld [vmem:[%s3868_s0 + $0x30] sm:$0xff] }
  0x31   : > { %1035 = vmatpush.msrb.mxu2 %v2622_v27  ;;  %v2813_v45 = vld [vmem:[%s3874_s7] ss:$0 sm:$0xff]  ;;  %v2610_v54 = vld [vmem:[%s3868_s0 + $0x28] sm:$0xff]  ;;  %s777_s7 = scalar_lea.vmem %s3875_s25, %s3122_s4  ;;  %v2627_v25 = vld [vmem:[%s3876_s9 + $0x10] sm:$0xff]  ;;  %s780_s30 = scalar_lea.vmem %s3878_s28, %s3119_s8 }
  0x32   : > { %v794_v6 = vmul.f32 %v2831_v3, %v793_v5  ;;  %845 = vmatpush.msra.mxu0 %v827_v17  ;;  %1011 = vmatpush.msrb.mxu1 %v2616_v28  ;;  %v2609_v55 = vld [vmem:[%s3868_s0 + $0x20] sm:$0xff]  ;;  %v966_v4 = vld [vmem:[%s3876_s9 + $0x8] sm:$0xff]  ;;  %s3883_s8 = sld [smem:[#allocation6_spill]] }
  0x33   : > { %1036 = vmatpush.msrb.mxu2 %v2621_v29  ;;  %v3233_v59 = vld [vmem:[%s777_s7] sm:$0xff]  ;;  %s3884_s4 = sld [smem:[#allocation9_spill]]  ;;  %s3886_s24 = smov %s3885_s27 }
  0x34   : > { %v795_v7 = vadd.f32 %v2831_v3, %v794_v6  ;;  %846 = vmatpush.msra.mxu0 %v826_v20  ;;  %1012 = vmatpush.msrb.mxu1 %v2615_v31  ;;  %vm928_vm6 = vcmp.eq.f32.partialorder %v3233_v59, 0.0 }
  0x35   : > { %1037 = vmatpush.msrb.mxu2 %v2620_v32 }
  0x36   : > { %v3129_v8 = vsel %vm796_vm1, %v2831_v3, %v795_v7  ;;  %847 = vmatpush.msra.mxu0 %v825_v23  ;;  %1013 = vmatpush.msrb.mxu1 %v2614_v34  ;;  %vm1595_vm1 = vcmask 523264  }
  0x37   : > { %1038 = vmatpush.msrb.mxu2 %v2619_v35 }
  0x38   : > { %s763_s23 = sand.u32 1, %s3883_s8  }
  0x39   : > { %s2599_s26 = sshll.u32 %s763_s23, 3  ;;  %s2768_s25 = sshll.u32 %s3884_s4, 3 }
  0x3a   : > { %s2498_s28 = scalar_lea.hbm %s3885_s27, %s2768_s25  ;;  %s2488_s7 = scalar_lea.sflag [#allocation3], %s763_s23 }
  0x9f   : > { %v790_v9 = vpop.xlane.xlu0 %789 }
  0xa0   : > { %v798_v10 = vmul.f32 %v3129_v8, %v790_v9 }
  0xa2   : > { %v799_v11 = vsub.f32 %v781_v0, %v798_v10 }
  0xa4   : > { %v800_v12 = vmul.f32 %v799_v11, %v799_v11 }
  0xa6   : > { %v801_v13 = vsel %vm787_vm0, %v800_v12, 0.0 }
  0xa7   : > { %802 = vadd.xlane.f32.xlu0 %v801_v13 }
 0x11a   : > { %v803_v30 = vpop.xlane.xlu0 %802 }
 0x11b   : > { %v804_v33 = vmul.f32 %v803_v30, %v3129_v8 }
 0x11d   : > { %v805_v36 = vadd.f32 1e-06, %v804_v33 }
 0x11f   : > { %2832 = vrsqrt.f32 %v805_v36  ;;  %vm812_vm3 = vweird.f32 %v805_v36 }
 0x125   : > { %v2833_v37 = vpop.eup %2832 }
 0x126   : > { %v807_v38 = vmul.f32 %v2833_v37, %v805_v36  ;;  %vm813_vm2 = vweird.f32 %v2833_v37 }
 0x127   : > { %vm814_vm4 = vmor %vm812_vm3, %vm813_vm2 }
 0x128   : > { %v808_v39 = vmul.f32 %v2833_v37, %v807_v38  ;;  %v1216_v38 = vld [vmem:[%s3815_s13 + $0x10] sm:$0xff] }
 0x12a   : > { %v809_v40 = vmul.f32 0.5, %v808_v39  ;;  %v1215_v39 = vld [vmem:[%s3815_s13 + $0x8] sm:$0xff] }
 0x12c   : > { %v810_v41 = vsub.f32 1.5, %v809_v40  ;;  %v3278_v40 = vld [vmem:[%s773_s2] sm:$0xff] }
 0x12e   : > { %v811_v42 = vmul.f32 %v2833_v37, %v810_v41  ;;  %v1214_v41 = vld [vmem:[%s3815_s13] sm:$0xff] }
 0x130   : > { %v815_v44 = vsel %vm814_vm4, %v2833_v37, %v811_v42  ;;  %v1217_v37 = vld [vmem:[%s3815_s13 + $0x18] sm:$0xff] }
 0x131   : > { %v816_v46 = vmul.f32 %v815_v44, %v799_v11  ;;  %v965_v11 = vld [vmem:[%s3876_s9] sm:$0xff]  ;;  %v1189_v42 = vld [vmem:[%s3814_s12 + $0x18] sm:$0xff]  ;;  %v1188_v44 = vld [vmem:[%s3814_s12 + $0x10] sm:$0xff] }
 0x133   : > { %v820_v47 = vmul.f32 %v2812_v43, %v816_v46  ;;  %v2640_v43 = vld [vmem:[%s3814_s12 + $0x38] sm:$0xff]  ;;  %v1187_v46 = vld [vmem:[%s3814_s12 + $0x8] sm:$0xff] }
 0x135   : > { %v3200_v48 = vadd.f32 %v2813_v45, %v820_v47  ;;  %v2639_v45 = vld [vmem:[%s3814_s12 + $0x30] sm:$0xff]  ;;  %v2638_v47 = vld [vmem:[%s3814_s12 + $0x28] sm:$0xff] }
 0x137   : > { %2603 = vmatmul.msk.f32.vlgmr.msra.gmra.mxu0 %vm787_vm0, %v3200_v48  ;;  %2604 = vmatmul.msk.f32.vlgmr.msra.gmra.mxu1 %vm787_vm0, %v3200_v48 }
 0x138   : > { %2605 = vmatmul.msk.f32.vlgmr.msra.gmra.mxu2 %vm787_vm0, %v3200_v48  ;;  %1124 = vmatpush.msra.mxu1 %v2628_v21  ;;  %v2642_v21 = vld [vmem:[%s3815_s13 + $0x20] sm:$0xff] }
 0x139   : > { %1147 = vmatpush.msra.mxu2 %v966_v4 }
 0x13a   : > { %1125 = vmatpush.msra.mxu1 %v2627_v25 }
 0x13b   : > { %1148 = vmatpush.msra.mxu2 %v965_v11 }
 0x13f   : > { %2618 = vmatmul.msk.f32.vlgmr.msrb.gmra.mxu1 %vm787_vm0, %v3200_v48 }
 0x140   : > { %2623 = vmatmul.msk.f32.vlgmr.msrb.gmra.mxu2 %vm787_vm0, %v3200_v48 }
 0x1b4   : > { %v849_v50 = vpop.f32.mrf.mxu0  ;;  %v874_v51 = vpop.f32.mrf.mxu1 }
 0x1b5   : > { %v852_v52 = vmul.f32 0.25, %v849_v50  ;;  %2606 = vmatpush.xpose.msk.msrb.mxu0 %vm901_vm5, %v874_v51 }
 0x1b8   : > { %2607 = vmatmul.msk.f32.vlgmr.msrb.gmra.mxu0 %vm901_vm5, %v852_v52 }
 0x1b9   : > { %984 = vmatpush.msra.mxu0 %v2612_v49  ;;  %v2637_v49 = vld [vmem:[%s3814_s12 + $0x20] sm:$0xff] }
 0x1bb   : > { %985 = vmatpush.msra.mxu0 %v2611_v53  ;;  %v898_v56 = vpop.f32.mrf.mxu2 }
 0x1bc   : > { %960 = vmatpush.msra.mxu3 %v898_v56  ;;  %v1015_v57 = vpop.f32.mrf.mxu1 }
 0x1bd   : > { %986 = vmatpush.msra.mxu0 %v2610_v54 }
 0x1be   : > { %2624 = vmatpush.xpose.msk.msrb.mxu3 %vm901_vm5, %v1015_v57 }
 0x1bf   : > { %987 = vmatpush.msra.mxu0 %v2609_v55 }
 0x1c0   : > { %2613 = vmatmul.msk.f32.vlgmr.msra.gmra.mxu0 %vm787_vm0, %v3200_v48 }
 0x1c3   : > { %v1040_v58 = vpop.f32.mrf.mxu2 }
 0x1c4   : > { %1099 = vmatpush.msrb.mxu0 %v1040_v58 }
 0x1c6   : > { %1233 = vmatpush.msra.mxu0 %v1217_v37 }
 0x1c8   : > { %1234 = vmatpush.msra.mxu0 %v1216_v38 }
 0x1ca   : > { %1235 = vmatpush.msra.mxu0 %v1215_v39  ;;  %v1330_v39 = vld [vmem:[%s3817_s15] sm:$0xff] }
 0x1cc   : > { %1236 = vmatpush.msra.mxu0 %v1214_v41 }
 0x235   : > { %v925_v60 = vpop.f32.mrf.mxu0 }
 0x236   : > { %v929_v61 = vsel %vm928_vm6, -1e+09, %v925_v60  ;;  %v2814_v60 = vld [vmem:[%s3812_s10] ss:$0 sm:$0xff] }
 0x237   : > { %v931_v62 = vsel %vm930_vm7, %v929_v61, -inf }
 0x238   : > { %932 = vmax.xlane.f32.xlu1 %v931_v62 }
 0x23d   : > { %v989_v9 = vpop.f32.mrf.mxu0 }
 0x23e   : > { %v992_v10 = vmul.f32 0.25, %v989_v9 }
 0x2ab   : > { %v933_v63 = vpop.xlane.xlu1 %932 }
 0x2ac   : > { %v934_v0 = vsub.f32 %v929_v61, %v933_v63  ;;  %v2815_v63 = vld [vmem:[%s3813_s11] ss:$0 sm:$0xff] }
 0x2ae   : > { %v935_v1 = vmul.f32 1.442695, %v934_v0 }
 0x2b0   : > { %2834 = vpow2.f32 %v935_v1 }
 0x2b6   : > { %v2835_v2 = vpop.eup %2834 }
 0x2b7   : > { %v937_v3 = vsel %vm930_vm7, %v2835_v2, 0.0 }
 0x2b8   : > { %938 = vadd.xlane.f32.xlu1 %v937_v3 }
 0x32b   : > { %v939_v5 = vpop.xlane.xlu1 %938 }
 0x32c   : > { %2836 = vrcp.f32 %v939_v5  ;;  %v784_v5 = vld [vmem:[%s780_s30] sm:$0x1]  ;;  %s3882_s30 = smov %s3881_s5 }
 0x32d   : > { %vm1291_vm11 = vcmp.eq.f32.partialorder %v784_v5, 0.0  ;;  %v1554_v5 = vld [vmem:[%s3820_s18 + $0x18] sm:$0xff] }
 0x332   : > { %v2837_v6 = vpop.eup %2836 }
 0x333   : > { %v941_v7 = vmul.f32 %v2837_v6, %v2835_v2  ;;  %v2943_v6 = vmov 0  }
 0x335   : > { %2608 = vmatmul.msk.f32.vlgmr.msra.gmra.mxu3 %vm930_vm7, %v941_v7  ;;  %v1292_v7 = vsel %vm1291_vm11, 1, %v2943_v6  ;;  %v1552_v6 = vld [vmem:[%s3820_s18 + $0x8] sm:$0xff] }
 0x336   : > { %1205 = vmatpush.msra.mxu3 %v1189_v42  ;;  %v1293_v9 = vperm.slane %v1292_v7, 0  ;;  %v1551_v7 = vld [vmem:[%s3820_s18] sm:$0xff] }
 0x338   : > { %1206 = vmatpush.msra.mxu3 %v1188_v44  ;;  %vm3328_vm12 = vcmp.eq.s32.totalorder %v1293_v9, 1  ;;  %v1590_v9 = vld [vmem:[%s3822_s20 + $0x38] sm:$0xff] }
 0x33a   : > { %1207 = vmatpush.msra.mxu3 %v1187_v46 }
 0x33d   : > { %2625 = vmatmul.msk.f32.vlgmr.msrb.gmra.mxu3 %vm901_vm5, %v992_v10 }
 0x3b8   : > { %v962_v12 = vpop.f32.mrf.mxu3 }
 0x3b9   : > { %2630 = vmatmul.msk.f32.vlgmr.msra.gmra.mxu2 %vm901_vm5, %v962_v12 }
 0x3c0   : > { %v1066_v13 = vpop.f32.mrf.mxu3 }
 0x3c1   : > { %v1069_v14 = vsel %vm928_vm6, -1e+09, %v1066_v13 }
 0x3c2   : > { %v1070_v15 = vsel %vm930_vm7, %v1069_v14, -inf }
 0x3c3   : > { %1071 = vmax.xlane.f32.xlu2 %v1070_v15  ;;  %v1243_v15 = vld [vmem:[%s3816_s14 + $0x10] sm:$0xff] }
 0x436   : > { %v1072_v16 = vpop.xlane.xlu2 %1071 }
 0x437   : > { %v1073_v17 = vsub.f32 %v1069_v14, %v1072_v16  ;;  %v1244_v14 = vld [vmem:[%s3816_s14 + $0x18] sm:$0xff]  ;;  %v1242_v16 = vld [vmem:[%s3816_s14 + $0x8] sm:$0xff] }
 0x438   : > { %1257 = vmatpush.msrb.mxu1 %v1244_v14 }
 0x439   : > { %v1074_v18 = vmul.f32 1.442695, %v1073_v17  ;;  %v1241_v17 = vld [vmem:[%s3816_s14] sm:$0xff] }
 0x43a   : > { %1258 = vmatpush.msrb.mxu1 %v1243_v15  ;;  %v1587_v15 = vld [vmem:[%s3822_s20 + $0x20] sm:$0xff] }
 0x43b   : > { %2838 = vpow2.f32 %v1074_v18  ;;  %v2645_v18 = vld [vmem:[%s3815_s13 + $0x38] sm:$0xff] }
 0x43c   : > { %v1150_v27 = vpop.f32.mrf.mxu2  ;;  %1259 = vmatpush.msrb.mxu1 %v1242_v16 }
 0x43e   : > { %1260 = vmatpush.msrb.mxu1 %v1241_v17  ;;  %v1586_v17 = vld [vmem:[%s3822_s20 + $0x18] sm:$0xff] }
 0x441   : > { %v2839_v19 = vpop.eup %2838 }
 0x442   : > { %v1076_v20 = vsel %vm930_vm7, %v2839_v19, 0.0 }
 0x443   : > { %1077 = vadd.xlane.f32.xlu2 %v1076_v20  ;;  %v2643_v20 = vld [vmem:[%s3815_s13 + $0x28] sm:$0xff] }
 0x4b6   : > { %v1078_v22 = vpop.xlane.xlu2 %1077 }
 0x4b7   : > { %2840 = vrcp.f32 %v1078_v22 }
 0x4bd   : > { %v2841_v23 = vpop.eup %2840 }
 0x4be   : > { %v1080_v24 = vmul.f32 %v2841_v23, %v2839_v19  ;;  %v2644_v19 = vld [vmem:[%s3815_s13 + $0x30] sm:$0xff] }
 0x4c0   : > { %2626 = vmatmul.msk.f32.vlgmr.msrb.gmra.mxu0 %vm930_vm7, %v1080_v24 }
 0x4c1   : > { %1349 = vmatpush.msrb.mxu0 %v2640_v43 }
 0x4c3   : > { %1350 = vmatpush.msrb.mxu0 %v2639_v45 }
 0x4c5   : > { %1351 = vmatpush.msrb.mxu0 %v2638_v47 }
 0x4c7   : > { %1352 = vmatpush.msrb.mxu0 %v2637_v49 }
 0x4c8   : > { %2632 = vmatmul.msk.f32.vlgmr.msra.gmra.mxu0 %vm787_vm0, %v3278_v40 }
 0x53d   : > { %v1101_v26 = vpop.f32.mrf.mxu0 }
 0x53e   : > { %2629 = vmatmul.msk.f32.vlgmr.msra.gmra.mxu1 %vm901_vm5, %v1101_v26 }
 0x53f   : > { %1375 = vmatpush.msra.mxu1 %v2645_v18 }
 0x541   : > { %1376 = vmatpush.msra.mxu1 %v2644_v19 }
 0x543   : > { %1377 = vmatpush.msra.mxu1 %v2643_v20 }
 0x545   : > { %v1238_v2 = vpop.f32.mrf.mxu0  ;;  %1378 = vmatpush.msra.mxu1 %v2642_v21 }
 0x546   : > { %2634 = vmatpush.xpose.msk.msrb.mxu2 %vm901_vm5, %v1238_v2  ;;  %2633 = vmatmul.msk.f32.vlgmr.msrb.gmra.mxu1 %vm787_vm0, %v3278_v40 }
 0x54e   : > { %2646 = vmatmul.msk.f32.vlgmr.msra.gmra.mxu1 %vm787_vm0, %v3278_v40 }
 0x5bb   : > { %v1127_v28 = vpop.f32.mrf.mxu1 }
 0x5bc   : > { %v1151_v29 = vadd.f32 %v1150_v27, %v1127_v28 }
 0x5be   : > { %v1153_v30 = vadd.f32 %v1151_v29, %v3200_v48  ;;  %v1186_v48 = vld [vmem:[%s3814_s12] sm:$0xff]  ;;  %v2650_v29 = vld [vmem:[%s3816_s14 + $0x38] sm:$0xff] }
 0x5bf   : > { %1208 = vmatpush.msra.mxu3 %v1186_v48  ;;  %1400 = vmatpush.msra.mxu2 %v2650_v29 }
 0x5c0   : > { %v1156_v31 = vsel %vm787_vm0, %v1153_v30, 0.0 }
 0x5c1   : > { %1157 = vadd.xlane.f32.xlu0 %v1156_v31  ;;  %v2648_v31 = vld [vmem:[%s3816_s14 + $0x28] sm:$0xff] }
 0x5c3   : > { %v1262_v27 = vpop.f32.mrf.mxu1 }
 0x5c4   : > { %1325 = vmatpush.msrb.mxu3 %v1262_v27  ;;  %v2817_v27 = vld [vmem:[%s3819_s17] ss:$0 sm:$0xff] }
 0x5cb   : > { %v1380_v28 = vpop.f32.mrf.mxu1 }
 0x634   : > { %v1158_v32 = vpop.xlane.xlu0 %1157 }
 0x635   : > { %v1159_v33 = vmul.f32 %v1158_v32, %v3129_v8  ;;  %v2647_v32 = vld [vmem:[%s3816_s14 + $0x20] sm:$0xff] }
 0x637   : > { %v1160_v34 = vsub.f32 %v1153_v30, %v1159_v33  ;;  %v2649_v30 = vld [vmem:[%s3816_s14 + $0x30] sm:$0xff]  ;;  %v1331_v33 = vld [vmem:[%s3817_s15 + $0x8] sm:$0xff] }
 0x638   : > { %1401 = vmatpush.msra.mxu2 %v2649_v30  ;;  %v1585_v30 = vld [vmem:[%s3822_s20 + $0x10] sm:$0xff] }
 0x639   : > { %v1161_v35 = vmul.f32 %v1160_v34, %v1160_v34 }
 0x63a   : > { %1402 = vmatpush.msra.mxu2 %v2648_v31  ;;  %v1584_v31 = vld [vmem:[%s3822_s20 + $0x8] sm:$0xff] }
 0x63b   : > { %v1162_v36 = vsel %vm787_vm0, %v1161_v35, 0.0 }
 0x63c   : > { %1163 = vadd.xlane.f32.xlu1 %v1162_v36  ;;  %1403 = vmatpush.msra.mxu2 %v2647_v32  ;;  %v1583_v32 = vld [vmem:[%s3822_s20] sm:$0xff] }
 0x6af   : > { %v1164_v50 = vpop.xlane.xlu1 %1163 }
 0x6b0   : > { %v1165_v51 = vmul.f32 %v1164_v50, %v3129_v8 }
 0x6b2   : > { %v1166_v52 = vadd.f32 1e-06, %v1165_v51  ;;  %v2656_v51 = vld [vmem:[%s3817_s15 + $0x18] sm:$0xff] }
 0x6b3   : > { %1489 = vmatpush.msrb.mxu1 %v2656_v51  ;;  %v2689_v51 = vld [vmem:[%s3870_s29 + $0x78] sm:$0xff] }
 0x6b4   : > { %2842 = vrsqrt.f32 %v1166_v52  ;;  %vm1173_vm9 = vweird.f32 %v1166_v52 }
 0x6ba   : > { %v2843_v53 = vpop.eup %2842 }
 0x6bb   : > { %v1168_v54 = vmul.f32 %v2843_v53, %v1166_v52  ;;  %vm1174_vm8 = vweird.f32 %v2843_v53 }
 0x6bc   : > { %vm1175_vm10 = vmor %vm1173_vm9, %vm1174_vm8 }
 0x6bd   : > { %v1169_v55 = vmul.f32 %v2843_v53, %v1168_v54 }
 0x6bf   : > { %v1170_v56 = vmul.f32 0.5, %v1169_v55  ;;  %v2655_v55 = vld [vmem:[%s3817_s15 + $0x10] sm:$0xff] }
 0x6c0   : > { %1490 = vmatpush.msrb.mxu1 %v2655_v55  ;;  %v2688_v55 = vld [vmem:[%s3870_s29 + $0x70] sm:$0xff] }
 0x6c1   : > { %v1171_v57 = vsub.f32 1.5, %v1170_v56 }
 0x6c3   : > { %v1172_v58 = vmul.f32 %v2843_v53, %v1171_v57 }
 0x6c5   : > { %v1176_v61 = vsel %vm1175_vm10, %v2843_v53, %v1172_v58 }
 0x6c6   : > { %v1177_v62 = vmul.f32 %v1176_v61, %v1160_v34 }
 0x6c8   : > { %v1181_v0 = vmul.f32 %v2814_v60, %v1177_v62 }
 0x6ca   : > { %v3316_v1 = vadd.f32 %v2815_v63, %v1181_v0 }
 0x6cc   : > { %2631 = vmatmul.msk.f32.vlgmr.msra.gmra.mxu3 %vm787_vm0, %v3316_v1  ;;  %2641 = vmatmul.msk.f32.vlgmr.msrb.gmra.mxu0 %vm787_vm0, %v3316_v1 }
 0x6cd   : > { %2652 = vmatpush.xpose.msk.msra.mxu3 %vm901_vm5, %v1380_v28 }
 0x749   : > { %v1354_v37 = vpop.f32.mrf.mxu0 }
 0x74a   : > { %v1357_v38 = vmul.f32 0.25, %v1354_v37  ;;  %v2819_v37 = vld [vmem:[%s3823_s21] ss:$0 sm:$0xff] }
 0x74f   : > { %v1210_v3 = vpop.f32.mrf.mxu3 }
 0x750   : > { %v1213_v4 = vmul.f32 0.25, %v1210_v3 }
 0x752   : > { %2635 = vmatmul.msk.f32.vlgmr.msrb.gmra.mxu2 %vm901_vm5, %v1213_v4 }
 0x753   : > { %1512 = vmatpush.msrb.mxu2 %v1331_v33  ;;  %v2818_v33 = vld [vmem:[%s3821_s19] ss:$0 sm:$0xff] }
 0x755   : > { %1513 = vmatpush.msrb.mxu2 %v1330_v39 }
 0x75a   : > { %2651 = vmatmul.msk.f32.vlgmr.msra.gmra.mxu2 %vm787_vm0, %v3278_v40 }
 0x7d5   : > { %v1288_v11 = vpop.f32.mrf.mxu2 }
 0x7d6   : > { %v1295_v12 = vsel %vm3328_vm12, -1e+09, %v1288_v11  ;;  %v1589_v11 = vld [vmem:[%s3822_s20 + $0x30] sm:$0xff] }
 0x7d7   : > { %v1296_v13 = vsel %vm930_vm7, %v1295_v12, -inf }
 0x7d8   : > { %1297 = vmax.xlane.f32.xlu2 %v1296_v13 }
 0x7dd   : > { %v1405_v41 = vpop.f32.mrf.mxu2 }
 0x7de   : > { %1464 = vmatpush.msra.mxu0 %v1405_v41 }
 0x7e0   : > { %1607 = vmatpush.msrb.mxu0 %v1590_v9 }
 0x7e2   : > { %1608 = vmatpush.msrb.mxu0 %v1589_v11 }
 0x84b   : > { %v1298_v22 = vpop.xlane.xlu2 %1297 }
 0x84c   : > { %v1299_v23 = vsub.f32 %v1295_v12, %v1298_v22  ;;  %v1588_v12 = vld [vmem:[%s3822_s20 + $0x28] sm:$0xff] }
 0x84d   : > { %1609 = vmatpush.msrb.mxu0 %v1588_v12 }
 0x84e   : > { %v1300_v24 = vmul.f32 1.442695, %v1299_v23 }
 0x84f   : > { %1610 = vmatpush.msrb.mxu0 %v1587_v15 }
 0x850   : > { %2844 = vpow2.f32 %v1300_v24  ;;  %v2816_v24 = vld [vmem:[%s3818_s16] ss:$0 sm:$0xff] }
 0x851   : > { %1611 = vmatpush.msrb.mxu0 %v1586_v17 }
 0x853   : > { %1612 = vmatpush.msrb.mxu0 %v1585_v30  ;;  %v2691_v30 = vld [vmem:[%s3872_s3 + $0x60] sm:$0xff] }
 0x855   : > { %1613 = vmatpush.msrb.mxu0 %v1584_v31 }
 0x856   : > { %v2845_v25 = vpop.eup %2844 }
 0x857   : > { %v1302_v26 = vsel %vm930_vm7, %v2845_v25, 0.0  ;;  %1614 = vmatpush.msrb.mxu0 %v1583_v32 }
 0x858   : > { %1303 = vadd.xlane.f32.xlu0 %v1302_v26 }
 0x8cb   : > { %v1304_v34 = vpop.xlane.xlu0 %1303 }
 0x8cc   : > { %2846 = vrcp.f32 %v1304_v34 }
 0x8d2   : > { %v2847_v35 = vpop.eup %2846 }
 0x8d3   : > { %v1306_v36 = vmul.f32 %v2847_v35, %v2845_v25 }
 0x8d5   : > { %2636 = vmatmul.msk.f32.vlgmr.msrb.gmra.mxu3 %vm930_vm7, %v1306_v36 }
 0x8d6   : > { %1574 = vmatpush.msrb.mxu3 %v1554_v5  ;;  %v2682_v5 = vld [vmem:[%s3868_s0 + $0x68] sm:$0xff] }
 0x8dd   : > { %2653 = vmatmul.msk.f32.vlgmr.msra.gmra.mxu3 %vm901_vm5, %v1357_v38 }
 0x958   : > { %v1327_v42 = vpop.f32.mrf.mxu3 }
 0x959   : > { %2658 = vmatmul.msk.f32.vlgmr.msrb.gmra.mxu2 %vm901_vm5, %v1327_v42 }
 0x960   : > { %v1431_v43 = vpop.f32.mrf.mxu3 }
 0x961   : > { %v1434_v44 = vsel %vm3328_vm12, -1e+09, %v1431_v43 }
 0x962   : > { %v1435_v45 = vsel %vm930_vm7, %v1434_v44, -inf }
 0x963   : > { %1436 = vmax.xlane.f32.xlu1 %v1435_v45 }
 0x9d6   : > { %v1437_v46 = vpop.xlane.xlu1 %1436 }
 0x9d7   : > { %v1438_v47 = vsub.f32 %v1434_v44, %v1437_v46 }
 0x9d9   : > { %v1439_v48 = vmul.f32 1.442695, %v1438_v47 }
 0x9db   : > { %2848 = vpow2.f32 %v1439_v48  ;;  %v2664_v48 = vld [vmem:[%s3868_s0 + $0x58] sm:$0xff] }
 0x9dc   : > { %v1515_v57 = vpop.f32.mrf.mxu2  ;;  %1672 = vmatpush.msra.mxu1 %v2664_v48 }
 0x9e1   : > { %v2849_v49 = vpop.eup %2848 }
 0x9e2   : > { %v1441_v50 = vsel %vm930_vm7, %v2849_v49, 0.0 }
 0x9e3   : > { %1442 = vadd.xlane.f32.xlu2 %v1441_v50  ;;  %v2674_v50 = vld [vmem:[%s3872_s3 + $0x58] sm:$0xff] }
 0xa56   : > { %v1443_v52 = vpop.xlane.xlu2 %1442 }
 0xa57   : > { %2850 = vrcp.f32 %v1443_v52  ;;  %v2663_v52 = vld [vmem:[%s3868_s0 + $0x50] sm:$0xff] }
 0xa58   : > { %1673 = vmatpush.msra.mxu1 %v2663_v52 }
 0xa5d   : > { %v2851_v53 = vpop.eup %2850 }
 0xa5e   : > { %v1445_v54 = vmul.f32 %v2851_v53, %v2849_v49  ;;  %v2669_v49 = vld [vmem:[%s3870_s29 + $0x58] sm:$0xff]  ;;  %v2668_v53 = vld [vmem:[%s3870_s29 + $0x50] sm:$0xff] }
 0xa5f   : > { %1698 = vmatpush.msra.mxu2 %v2669_v49 }
 0xa60   : > { %2654 = vmatmul.msk.f32.vlgmr.msra.gmra.mxu0 %vm930_vm7, %v1445_v54  ;;  %v2673_v54 = vld [vmem:[%s3872_s3 + $0x50] sm:$0xff] }
 0xa61   : > { %1838 = vmatpush.msra.mxu0 %v2689_v51  ;;  %1699 = vmatpush.msra.mxu2 %v2668_v53 }
 0xa63   : > { %1839 = vmatpush.msra.mxu0 %v2688_v55 }
 0xadd   : > { %v1466_v56 = vpop.f32.mrf.mxu0 }
 0xade   : > { %2657 = vmatmul.msk.f32.vlgmr.msrb.gmra.mxu1 %vm901_vm5, %v1466_v56  ;;  %v2662_v56 = vld [vmem:[%s3868_s0 + $0x48] sm:$0xff] }
 0xadf   : > { %1674 = vmatpush.msra.mxu1 %v2662_v56 }
 0xb5b   : > { %v1492_v58 = vpop.f32.mrf.mxu1 }
 0xb5c   : > { %v1516_v60 = vadd.f32 %v1515_v57, %v1492_v58  ;;  %v2667_v57 = vld [vmem:[%s3870_s29 + $0x48] sm:$0xff] }
 0xb5d   : > { %v2672_v58 = vld [vmem:[%s3872_s3 + $0x48] sm:$0xff]  ;;  %1700 = vmatpush.msra.mxu2 %v2667_v57  ;;  %v2700_v57 = vld [vmem:[%s3876_s9 + $0x38] sm:$0xff] }
 0xb5e   : > { %v1518_v61 = vadd.f32 %v1516_v60, %v3316_v1  ;;  %v1553_v1 = vld [vmem:[%s3820_s18 + $0x10] sm:$0xff]  ;;  %v2687_v60 = vld [vmem:[%s3870_s29 + $0x68] sm:$0xff] }
 0xb5f   : > { %1575 = vmatpush.msrb.mxu3 %v1553_v1  ;;  %1840 = vmatpush.msra.mxu0 %v2687_v60 }
 0xb60   : > { %v1521_v62 = vsel %vm787_vm0, %v1518_v61, 0.0 }
 0xb61   : > { %1522 = vadd.xlane.f32.xlu0 %v1521_v62  ;;  %1576 = vmatpush.msrb.mxu3 %v1552_v6  ;;  %v2666_v62 = vld [vmem:[%s3870_s29 + $0x40] sm:$0xff] }
 0xb62   : > { %1701 = vmatpush.msra.mxu2 %v2666_v62  ;;  %v2681_v6 = vld [vmem:[%s3868_s0 + $0x60] sm:$0xff] }
 0xb63   : > { %1577 = vmatpush.msrb.mxu3 %v1551_v7 }
 0xb65   : > { %1723 = vmatpush.msra.mxu3 %v2674_v50 }
 0xb67   : > { %1724 = vmatpush.msra.mxu3 %v2673_v54 }
 0xb69   : > { %1725 = vmatpush.msra.mxu3 %v2672_v58 }
 0xbd4   : > { %v1523_v63 = vpop.xlane.xlu0 %1522 }
 0xbd5   : > { %v1524_v0 = vmul.f32 %v1523_v63, %v3129_v8  ;;  %v2671_v63 = vld [vmem:[%s3872_s3 + $0x40] sm:$0xff] }
 0xbd6   : > { %1726 = vmatpush.msra.mxu3 %v2671_v63 }
 0xbd7   : > { %v1525_v2 = vsub.f32 %v1518_v61, %v1524_v0  ;;  %v2661_v61 = vld [vmem:[%s3868_s0 + $0x40] sm:$0xff] }
 0xbd8   : > { %v2686_v0 = vld [vmem:[%s3870_s29 + $0x60] sm:$0xff]  ;;  %1675 = vmatpush.msra.mxu1 %v2661_v61  ;;  %v2699_v61 = vld [vmem:[%s3876_s9 + $0x30] sm:$0xff] }
 0xbd9   : > { %v1526_v3 = vmul.f32 %v1525_v2, %v1525_v2  ;;  %1841 = vmatpush.msra.mxu0 %v2686_v0 }
 0xbdb   : > { %v1527_v4 = vsel %vm787_vm0, %v1526_v3, 0.0  ;;  %v2683_v3 = vld [vmem:[%s3868_s0 + $0x70] sm:$0xff] }
 0xbdc   : > { %1528 = vadd.xlane.f32.xlu1 %v1527_v4 }
 0xc4f   : > { %v1529_v13 = vpop.xlane.xlu1 %1528 }
 0xc50   : > { %v1530_v14 = vmul.f32 %v1529_v13, %v3129_v8 }
 0xc52   : > { %v1531_v16 = vadd.f32 1e-06, %v1530_v14 }
 0xc54   : > { %2852 = vrsqrt.f32 %v1531_v16  ;;  %vm1538_vm14 = vweird.f32 %v1531_v16 }
 0xc5a   : > { %v2853_v18 = vpop.eup %2852 }
 0xc5b   : > { %v1533_v19 = vmul.f32 %v2853_v18, %v1531_v16  ;;  %vm1539_vm13 = vweird.f32 %v2853_v18  ;;  %v2820_v16 = vld [vmem:[%s3824_s22] ss:$0 sm:$0xff] }
 0xc5c   : > { %vm1540_vm15 = vmor %vm1538_vm14, %vm1539_vm13 }
 0xc5d   : > { %v1534_v20 = vmul.f32 %v2853_v18, %v1533_v19 }
 0xc5f   : > { %v1535_v21 = vmul.f32 0.5, %v1534_v20 }
 0xc61   : > { %v1536_v22 = vsub.f32 1.5, %v1535_v21 }
 0xc63   : > { %v1537_v23 = vmul.f32 %v2853_v18, %v1536_v22 }
 0xc65   : > { %v1541_v25 = vsel %vm1540_vm15, %v2853_v18, %v1537_v23  ;;  %v2821_v18 = vld [vmem:[%s3881_s5] ss:$0 sm:$0xff]  ;;  %v2694_v23 = vld [vmem:[%s3872_s3 + $0x78] sm:$0xff] }
 0xc66   : > { %v1542_v26 = vmul.f32 %v1541_v25, %v1525_v2  ;;  %v2684_v2 = vld [vmem:[%s3868_s0 + $0x78] sm:$0xff] }
 0xc68   : > { %v1546_v28 = vmul.f32 %v2816_v24, %v1542_v26 }
 0xc6a   : > { %v1550_v29 = vadd.f32 %v2817_v27, %v1546_v28  ;;  %v2693_v28 = vld [vmem:[%s3872_s3 + $0x70] sm:$0xff] }
 0xc6c   : > { %2659 = vmatmul.msk.f32.vlgmr.msrb.gmra.mxu3 %vm787_vm0, %v1550_v29 }
 0xc6d   : > { %1812 = vmatpush.msrb.mxu3 %v2684_v2 }
 0xc6f   : > { %1813 = vmatpush.msrb.mxu3 %v2683_v3 }
 0xc71   : > { %1814 = vmatpush.msrb.mxu3 %v2682_v5 }
 0xc73   : > { %1815 = vmatpush.msrb.mxu3 %v2681_v6 }
 0xcef   : > { %v1579_v34 = vpop.f32.mrf.mxu3 }
 0xcf0   : > { %v1580_v35 = vadd.f32 %v2818_v33, %v1579_v34 }
 0xcf2   : > { %v1582_v36 = vmax.f32 %v1580_v35, 0.0 }
 0xcf4   : > { %2660 = vmatmul.msk.f32.vlgmr.msrb.gmra.mxu0 %vm1595_vm1, %v1582_v36 }
 0xcf5   : > { %1952 = vmatpush.msrb.mxu0 %v2700_v57 }
 0xcf7   : > { %1953 = vmatpush.msrb.mxu0 %v2699_v61  ;;  %v2737_v61 = vld [vmem:[%s3816_s14 + $0x70] sm:$0xff] }
 0xd71   : > { %v1616_v38 = vpop.f32.mrf.mxu0 }
 0xd72   : > { %v1617_v39 = vadd.f32 %v2819_v37, %v1616_v38 }
 0xd74   : > { %v1619_v41 = vadd.f32 %v1617_v39, %v1550_v29  ;;  %v2692_v29 = vld [vmem:[%s3872_s3 + $0x68] sm:$0xff]  ;;  %s765_s3 = scalar_lea.vmem [#allocation2], %s2599_s26  ;;  %s2898_s26 = scalar_lea.hbm %s3886_s24, 16 }
 0xd75   : > { %s2500_s4 = sshll.u32 %s765_s3, 4  ;;  %s2501_s4 = int_to_ptr.vmem [resolvable:$true] %s2500_s4 }
 0xd76   : > { %v1622_v42 = vsel %vm787_vm0, %v1619_v41, 0.0 }
 0xd77   : > { %1623 = vadd.xlane.f32.xlu2 %v1622_v42 }
 0xdea   : > { %v1624_v43 = vpop.xlane.xlu2 %1623 }
 0xdeb   : > { %v1625_v44 = vmul.f32 %v1624_v43, %v3129_v8 }
 0xded   : > { %v1626_v45 = vsub.f32 %v1619_v41, %v1625_v44  ;;  %v2680_v41 = vld [vmem:[%s3876_s9 + $0x28] sm:$0xff] }
 0xdef   : > { %v1627_v46 = vmul.f32 %v1626_v45, %v1626_v45 }
 0xdf1   : > { %v1628_v47 = vsel %vm787_vm0, %v1627_v46, 0.0 }
 0xdf2   : > { %1629 = vadd.xlane.f32.xlu0 %v1628_v47  ;;  %v2679_v47 = vld [vmem:[%s3876_s9 + $0x20] sm:$0xff]  ;;  %s2502_s9 = sshll.u32 %s2498_s28, 4  ;;  %s2503_s9 = int_to_ptr.hbm [resolvable:$true] %s2502_s9 }
 0xdf3   : > { %s2892_s1 = sshra.s32 %s2503_s9, 4  ;;  %s2893_s1 = int_to_ptr.hbm [resolvable:$true] %s2892_s1 }
 0xdf4   : > { %s2894_s25 = scalar_lea.hbm %s2893_s1, 8  ;;  %p2899_p0 = scmp.lt.s32.totalorder %s2893_s1, %s3886_s24 }
 0xdf5   : > { %p2895_p11 = scmp.ne.s32.totalorder %s2893_s1, %s2894_s25  ;;  %p2900_p1 = scmp.lt.s32.totalorder %s2898_s26, %s2894_s25 }
 0xdf7   : > { %p2896_p12 = pnand %p2895_p11, %p3107_p5  ;;  %p2901_p2 = por %p2900_p1, %p2899_p0 }
 0xdf9   : > { %p2897_p13 = pneg %p2896_p12 }
 0xdfb   : > { %p2902_p3 = pnand %p2901_p2, %p2897_p13 }
 0xe65   : > { %v1630_v4 = vpop.xlane.xlu0 %1629 }
 0xe66   : > { %v1631_v1 = vmul.f32 %v1630_v4, %v3129_v8 }
 0xe68   : > { %v1632_v7 = vadd.f32 1e-06, %v1631_v1 }
 0xe6a   : > { %2854 = vrsqrt.f32 %v1632_v7  ;;  %vm1639_vm3 = vweird.f32 %v1632_v7 }
 0xe70   : > { %v2855_v9 = vpop.eup %2854 }
 0xe71   : > { %v1634_v11 = vmul.f32 %v2855_v9, %v1632_v7  ;;  %vm1640_vm2 = vweird.f32 %v2855_v9 }
 0xe72   : > { %vm1641_vm4 = vmor %vm1639_vm3, %vm1640_vm2 }
 0xe73   : > { %v1635_v12 = vmul.f32 %v2855_v9, %v1634_v11  ;;  %v2713_v11 = vld [vmem:[%s3815_s13 + $0x58] sm:$0xff] }
 0xe75   : > { %v1636_v13 = vmul.f32 0.5, %v1635_v12  ;;  %v2712_v12 = vld [vmem:[%s3815_s13 + $0x50] sm:$0xff] }
 0xe77   : > { %v1637_v14 = vsub.f32 1.5, %v1636_v13  ;;  %v2711_v13 = vld [vmem:[%s3815_s13 + $0x48] sm:$0xff] }
 0xe79   : > { %v1638_v15 = vmul.f32 %v2855_v9, %v1637_v14  ;;  %v2710_v14 = vld [vmem:[%s3815_s13 + $0x40] sm:$0xff] }
 0xe7b   : > { %v1642_v17 = vsel %vm1641_vm4, %v2855_v9, %v1638_v15  ;;  %v2708_v15 = vld [vmem:[%s3814_s12 + $0x58] sm:$0xff] }
 0xe7c   : > { %v1643_v19 = vmul.f32 %v1642_v17, %v1626_v45  ;;  %v2707_v17 = vld [vmem:[%s3814_s12 + $0x50] sm:$0xff] }
 0xe7e   : > { %v1647_v20 = vmul.f32 %v2820_v16, %v1643_v19  ;;  %v2728_v16 = vld [vmem:[%s3814_s12 + $0x78] sm:$0xff]  ;;  %v2706_v19 = vld [vmem:[%s3814_s12 + $0x48] sm:$0xff] }
 0xe80   : > { %v3525_v21 = vadd.f32 %v2821_v18, %v1647_v20  ;;  %v2727_v18 = vld [vmem:[%s3814_s12 + $0x70] sm:$0xff]  ;;  %v2726_v20 = vld [vmem:[%s3814_s12 + $0x68] sm:$0xff] }
 0xe82   : > { %2665 = vmatmul.msk.f32.vlgmr.msra.gmra.mxu1 %vm787_vm0, %v3525_v21  ;;  %2670 = vmatmul.msk.f32.vlgmr.msra.gmra.mxu2 %vm787_vm0, %v3525_v21 }
 0xe83   : > { %2675 = vmatmul.msk.f32.vlgmr.msra.gmra.mxu3 %vm787_vm0, %v3525_v21  ;;  %2690 = vmatmul.msk.f32.vlgmr.msra.gmra.mxu0 %vm787_vm0, %v3525_v21 }
 0xe8b   : > { %2685 = vmatmul.msk.f32.vlgmr.msrb.gmra.mxu3 %vm787_vm0, %v3525_v21 }
 0xeff   : > { %v1677_v22 = vpop.f32.mrf.mxu1 }
 0xf00   : > { %v1680_v26 = vmul.f32 0.25, %v1677_v22  ;;  %v1843_v27 = vpop.f32.mrf.mxu0  ;;  %v2725_v22 = vld [vmem:[%s3814_s12 + $0x60] sm:$0xff] }
 0xf05   : > { %v1703_v24 = vpop.f32.mrf.mxu2 }
 0xf06   : > { %v1728_v25 = vpop.f32.mrf.mxu3  ;;  %2676 = vmatpush.xpose.msk.msrb.mxu1 %vm901_vm5, %v1703_v24 }
 0xf07   : > { %1787 = vmatpush.msrb.mxu2 %v1728_v25 }
 0xf09   : > { %2696 = vmatpush.xpose.msk.msra.mxu2 %vm901_vm5, %v1843_v27  ;;  %2677 = vmatmul.msk.f32.vlgmr.msrb.gmra.mxu1 %vm901_vm5, %v1680_v26 }
 0xf0a   : > { %1863 = vmatpush.msra.mxu1 %v2694_v23 }
 0xf0c   : > { %1864 = vmatpush.msra.mxu1 %v2693_v28 }
 0xf0e   : > { %1865 = vmatpush.msra.mxu1 %v2692_v29  ;;  %v1817_v45 = vpop.f32.mrf.mxu3 }
 0xf0f   : > { %v1820_v46 = vmul.f32 0.25, %v1817_v45  ;;  %v2718_v45 = vld [vmem:[%s3816_s14 + $0x58] sm:$0xff] }
 0xf10   : > { %1866 = vmatpush.msra.mxu1 %v2691_v30  ;;  %2087 = vmatpush.msra.mxu0 %v2718_v45  ;;  %v2758_v45 = vld [vmem:[%s3822_s20 + $0x58] sm:$0xff] }
 0xf11   : > { %2695 = vmatmul.msk.f32.vlgmr.msra.gmra.mxu1 %vm787_vm0, %v3525_v21 }
 0xf12   : > { %1975 = vmatpush.msrb.mxu1 %v2680_v41 }
 0xf14   : > { %1976 = vmatpush.msrb.mxu1 %v2679_v47  ;;  %v2716_v47 = vld [vmem:[%s3816_s14 + $0x48] sm:$0xff] }
 0xf86   : > { %v1754_v31 = vpop.f32.mrf.mxu1 }
 0xf87   : > { %v1757_v32 = vsel %vm928_vm6, -1e+09, %v1754_v31 }
 0xf88   : > { %v1758_v33 = vsel %vm930_vm7, %v1757_v32, -inf }
 0xf89   : > { %1759 = vmax.xlane.f32.xlu1 %v1758_v33 }
 0xf8e   : > { %v1868_v34 = vpop.f32.mrf.mxu1 }
 0xf8f   : > { %1927 = vmatpush.msra.mxu3 %v1868_v34 }
 0xf91   : > { %2062 = vmatpush.msrb.mxu3 %v2713_v11 }
 0xf93   : > { %2063 = vmatpush.msrb.mxu3 %v2712_v12 }
 0xf95   : > { %2064 = vmatpush.msrb.mxu3 %v2711_v13 }
 0xf97   : > { %2065 = vmatpush.msrb.mxu3 %v2710_v14 }
 0xffc   : > { %v1760_v35 = vpop.xlane.xlu1 %1759 }
 0xffd   : > { %v1761_v36 = vsub.f32 %v1757_v32, %v1760_v35  ;;  %v2822_v32 = vld [vmem:[%s3812_s10 + $0x1] ss:$0 sm:$0xff] }
 0xffe   : > { %v2823_v35 = vld [vmem:[%s3813_s11 + $0x1] ss:$0 sm:$0xff] }
 0xfff   : > { %v1762_v37 = vmul.f32 1.442695, %v1761_v36 }
0x1001   : > { %2856 = vpow2.f32 %v1762_v37 }
0x1007   : > { %v2857_v38 = vpop.eup %2856 }
0x1008   : > { %v1764_v39 = vsel %vm930_vm7, %v2857_v38, 0.0 }
0x1009   : > { %1765 = vadd.xlane.f32.xlu2 %v1764_v39 }
0x107c   : > { %v1766_v42 = vpop.xlane.xlu2 %1765 }
0x107d   : > { %2858 = vrcp.f32 %v1766_v42 }
0x1083   : > { %v2859_v43 = vpop.eup %2858 }
0x1084   : > { %v1768_v44 = vmul.f32 %v2859_v43, %v2857_v38 }
0x1086   : > { %2678 = vmatmul.msk.f32.vlgmr.msrb.gmra.mxu2 %vm930_vm7, %v1768_v44 }
0x1087   : > { %2036 = vmatpush.msrb.mxu2 %v2708_v15 }
0x1089   : > { %2037 = vmatpush.msrb.mxu2 %v2707_v17 }
0x108b   : > { %2038 = vmatpush.msrb.mxu2 %v2706_v19 }
0x108e   : > { %2697 = vmatmul.msk.f32.vlgmr.msra.gmra.mxu2 %vm901_vm5, %v1820_v46  ;;  %v2717_v46 = vld [vmem:[%s3816_s14 + $0x50] sm:$0xff] }
0x108f   : > { %2088 = vmatpush.msra.mxu0 %v2717_v46 }
0x1091   : > { %2089 = vmatpush.msra.mxu0 %v2716_v47 }
0x1109   : > { %v1789_v48 = vpop.f32.mrf.mxu2 }
0x110a   : > { %2702 = vmatmul.msk.f32.vlgmr.msrb.gmra.mxu1 %vm901_vm5, %v1789_v48  ;;  %v2715_v48 = vld [vmem:[%s3816_s14 + $0x40] sm:$0xff] }
0x110b   : > { %2090 = vmatpush.msra.mxu0 %v2715_v48 }
0x1111   : > { %v1894_v49 = vpop.f32.mrf.mxu2 }
0x1112   : > { %v1897_v50 = vsel %vm928_vm6, -1e+09, %v1894_v49  ;;  %v2733_v49 = vld [vmem:[%s3815_s13 + $0x78] sm:$0xff] }
0x1113   : > { %v1898_v51 = vsel %vm930_vm7, %v1897_v50, -inf }
0x1114   : > { %1899 = vmax.xlane.f32.xlu0 %v1898_v51  ;;  %v2731_v51 = vld [vmem:[%s3815_s13 + $0x68] sm:$0xff] }
0x1187   : > { %v1900_v52 = vpop.xlane.xlu0 %1899  ;;  %v1978_v63 = vpop.f32.mrf.mxu1 }
0x1188   : > { %v1901_v53 = vsub.f32 %v1897_v50, %v1900_v52  ;;  %v2732_v50 = vld [vmem:[%s3815_s13 + $0x70] sm:$0xff]  ;;  %v2730_v52 = vld [vmem:[%s3815_s13 + $0x60] sm:$0xff] }
0x118a   : > { %v1902_v54 = vmul.f32 1.442695, %v1901_v53 }
0x118c   : > { %2860 = vpow2.f32 %v1902_v54 }
0x1192   : > { %v2861_v55 = vpop.eup %2860 }
0x1193   : > { %v1904_v56 = vsel %vm930_vm7, %v2861_v55, 0.0 }
0x1194   : > { %1905 = vadd.xlane.f32.xlu1 %v1904_v56 }
0x1207   : > { %v1906_v58 = vpop.xlane.xlu1 %1905 }
0x1208   : > { %2862 = vrcp.f32 %v1906_v58 }
0x120e   : > { %v2863_v59 = vpop.eup %2862 }
0x120f   : > { %v1908_v60 = vmul.f32 %v2863_v59, %v2861_v55 }
0x1211   : > { %2698 = vmatmul.msk.f32.vlgmr.msra.gmra.mxu3 %vm930_vm7, %v1908_v60  ;;  %v2738_v60 = vld [vmem:[%s3816_s14 + $0x78] sm:$0xff] }
0x1212   : > { %2176 = vmatpush.msra.mxu3 %v2728_v16 }
0x1214   : > { %2177 = vmatpush.msra.mxu3 %v2727_v18  ;;  %v2744_v18 = vld [vmem:[%s3817_s15 + $0x38] sm:$0xff] }
0x1216   : > { %2178 = vmatpush.msra.mxu3 %v2726_v20 }
0x1218   : > { %2179 = vmatpush.msra.mxu3 %v2725_v22 }
0x1219   : > { %2714 = vmatmul.msk.f32.vlgmr.msrb.gmra.mxu3 %vm787_vm0, %v3278_v40 }
0x1294   : > { %v1929_v62 = vpop.f32.mrf.mxu3 }
0x1295   : > { %2701 = vmatmul.msk.f32.vlgmr.msrb.gmra.mxu0 %vm901_vm5, %v1929_v62  ;;  %v2736_v62 = vld [vmem:[%s3816_s14 + $0x68] sm:$0xff] }
0x1296   : > { %2202 = vmatpush.msrb.mxu0 %v2733_v49 }
0x1298   : > { %2203 = vmatpush.msrb.mxu0 %v2732_v50 }
0x129a   : > { %2204 = vmatpush.msrb.mxu0 %v2731_v51 }
0x129c   : > { %v2067_v38 = vpop.f32.mrf.mxu3  ;;  %2205 = vmatpush.msrb.mxu0 %v2730_v52  ;;  %v2824_v52 = vld [vmem:[%s3818_s16 + $0x1] ss:$0 sm:$0xff] }
0x129d   : > { %2720 = vmatpush.xpose.msk.msra.mxu1 %vm901_vm5, %v2067_v38  ;;  %2719 = vmatmul.msk.f32.vlgmr.msra.gmra.mxu0 %vm787_vm0, %v3278_v40  ;;  %v2761_v38 = vld [vmem:[%s3822_s20 + $0x70] sm:$0xff] }
0x129e   : > { %2316 = vmatpush.msra.mxu0 %v2744_v18 }
0x12a1   : > { %2227 = vmatpush.msrb.mxu1 %v2738_v60  ;;  %v2755_v60 = vld [vmem:[%s3822_s20 + $0x40] sm:$0xff] }
0x12a3   : > { %2228 = vmatpush.msrb.mxu1 %v2737_v61  ;;  %v2826_v61 = vld [vmem:[%s3821_s19 + $0x1] ss:$0 sm:$0xff] }
0x12a5   : > { %2734 = vmatmul.msk.f32.vlgmr.msrb.gmra.mxu0 %vm787_vm0, %v3278_v40  ;;  %2229 = vmatpush.msrb.mxu1 %v2736_v62 }
0x1312   : > { %v1955_v0 = vpop.f32.mrf.mxu0 }
0x1313   : > { %v1979_v2 = vadd.f32 %v1978_v63, %v1955_v0  ;;  %v2735_v63 = vld [vmem:[%s3816_s14 + $0x60] sm:$0xff]  ;;  %v2724_v0 = vld [vmem:[%s3817_s15 + $0x28] sm:$0xff] }
0x1314   : > { %2230 = vmatpush.msrb.mxu1 %v2735_v63 }
0x1315   : > { %v1981_v3 = vadd.f32 %v1979_v2, %v3525_v21  ;;  %v2705_v21 = vld [vmem:[%s3814_s12 + $0x40] sm:$0xff] }
0x1316   : > { %2039 = vmatpush.msrb.mxu2 %v2705_v21  ;;  %v2743_v21 = vld [vmem:[%s3817_s15 + $0x30] sm:$0xff] }
0x1317   : > { %v1986_v4 = vsel %vm787_vm0, %v1981_v3, 0.0  ;;  %2317 = vmatpush.msra.mxu0 %v2743_v21 }
0x1318   : > { %1987 = vadd.xlane.f32.xlu2 %v1986_v4 }
0x131a   : > { %v2092_v58 = vpop.f32.mrf.mxu0 }
0x131b   : > { %2151 = vmatpush.msra.mxu2 %v2092_v58  ;;  %v2757_v58 = vld [vmem:[%s3822_s20 + $0x50] sm:$0xff] }
0x1322   : > { %v2207_v59 = vpop.f32.mrf.mxu0 }
0x138b   : > { %v1988_v5 = vpop.xlane.xlu2 %1987 }
0x138c   : > { %v1989_v1 = vmul.f32 %v1988_v5, %v3129_v8 }
0x138e   : > { %v1990_v6 = vsub.f32 %v1981_v3, %v1989_v1 }
0x1390   : > { %v1991_v7 = vmul.f32 %v1990_v6, %v1990_v6 }
0x1392   : > { %v1992_v9 = vsel %vm787_vm0, %v1991_v7, 0.0 }
0x1393   : > { %1993 = vadd.xlane.f32.xlu0 %v1992_v9 }
0x1406   : > { %v1994_v23 = vpop.xlane.xlu0 %1993 }
0x1407   : > { %v1995_v24 = vmul.f32 %v1994_v23, %v3129_v8 }
0x1409   : > { %v1996_v25 = vadd.f32 1e-06, %v1995_v24 }
0x140b   : > { %2864 = vrsqrt.f32 %v1996_v25  ;;  %vm2003_vm8 = vweird.f32 %v1996_v25 }
0x1411   : > { %v2865_v26 = vpop.eup %2864 }
0x1412   : > { %v1998_v27 = vmul.f32 %v2865_v26, %v1996_v25  ;;  %vm2004_vm6 = vweird.f32 %v2865_v26 }
0x1413   : > { %vm2005_vm9 = vmor %vm2003_vm8, %vm2004_vm6 }
0x1414   : > { %v1999_v28 = vmul.f32 %v2865_v26, %v1998_v27 }
0x1416   : > { %v2000_v29 = vmul.f32 0.5, %v1999_v28 }
0x1418   : > { %v2001_v30 = vsub.f32 1.5, %v2000_v29 }
0x141a   : > { %v2002_v31 = vmul.f32 %v2865_v26, %v2001_v30 }
0x141c   : > { %v2006_v33 = vsel %vm2005_vm9, %v2865_v26, %v2002_v31 }
0x141d   : > { %v2007_v34 = vmul.f32 %v2006_v33, %v1990_v6  ;;  %v2723_v6 = vld [vmem:[%s3817_s15 + $0x20] sm:$0xff]  ;;  %v2752_v33 = vld [vmem:[%s3820_s18 + $0x38] sm:$0xff] }
0x141f   : > { %v2011_v36 = vmul.f32 %v2822_v32, %v2007_v34  ;;  %v2751_v34 = vld [vmem:[%s3820_s18 + $0x30] sm:$0xff] }
0x1421   : > { %v3628_v37 = vadd.f32 %v2823_v35, %v2011_v36  ;;  %v2750_v35 = vld [vmem:[%s3820_s18 + $0x28] sm:$0xff]  ;;  %v2749_v36 = vld [vmem:[%s3820_s18 + $0x20] sm:$0xff] }
0x1423   : > { %2709 = vmatmul.msk.f32.vlgmr.msrb.gmra.mxu2 %vm787_vm0, %v3628_v37  ;;  %2729 = vmatmul.msk.f32.vlgmr.msra.gmra.mxu3 %vm787_vm0, %v3628_v37 }
0x1424   : > { %2740 = vmatpush.xpose.msk.msrb.mxu2 %vm901_vm5, %v2207_v59  ;;  %v2756_v59 = vld [vmem:[%s3822_s20 + $0x48] sm:$0xff] }
0x14a6   : > { %v2041_v39 = vpop.f32.mrf.mxu2  ;;  %v2181_v5 = vpop.f32.mrf.mxu3 }
0x14a7   : > { %v2044_v41 = vmul.f32 0.25, %v2041_v39  ;;  %v2184_v1 = vmul.f32 0.25, %v2181_v5  ;;  %v2760_v39 = vld [vmem:[%s3822_s20 + $0x68] sm:$0xff] }
0x14a9   : > { %2721 = vmatmul.msk.f32.vlgmr.msra.gmra.mxu1 %vm901_vm5, %v2044_v41 }
0x14aa   : > { %2339 = vmatpush.msra.mxu1 %v2724_v0 }
0x14ac   : > { %2340 = vmatpush.msra.mxu1 %v2723_v6 }
0x14b1   : > { %2739 = vmatmul.msk.f32.vlgmr.msrb.gmra.mxu1 %vm787_vm0, %v3278_v40 }
0x1526   : > { %v2118_v42 = vpop.f32.mrf.mxu1 }
0x1527   : > { %v2121_v43 = vsel %vm3328_vm12, -1e+09, %v2118_v42 }
0x1528   : > { %v2122_v44 = vsel %vm930_vm7, %v2121_v43, -inf }
0x1529   : > { %2123 = vmax.xlane.f32.xlu1 %v2122_v44 }
0x152e   : > { %v2232_v7 = vpop.f32.mrf.mxu1 }
0x152f   : > { %2291 = vmatpush.msrb.mxu3 %v2232_v7 }
0x159c   : > { %v2124_v53 = vpop.xlane.xlu1 %2123 }
0x159d   : > { %v2125_v54 = vsub.f32 %v2121_v43, %v2124_v53  ;;  %v2759_v43 = vld [vmem:[%s3822_s20 + $0x60] sm:$0xff] }
0x159f   : > { %v2126_v55 = vmul.f32 1.442695, %v2125_v54 }
0x15a1   : > { %2866 = vpow2.f32 %v2126_v55  ;;  %v2825_v55 = vld [vmem:[%s3819_s17 + $0x1] ss:$0 sm:$0xff] }
0x15a7   : > { %v2867_v56 = vpop.eup %2866 }
0x15a8   : > { %v2128_v57 = vsel %vm930_vm7, %v2867_v56, 0.0 }
0x15a9   : > { %2129 = vadd.xlane.f32.xlu2 %v2128_v57 }
0x161c   : > { %v2130_v2 = vpop.xlane.xlu2 %2129 }
0x161d   : > { %2868 = vrcp.f32 %v2130_v2  ;;  %v2827_v2 = vld [vmem:[%s3823_s21 + $0x1] ss:$0 sm:$0xff] }
0x1623   : > { %v2869_v3 = vpop.eup %2868 }
0x1624   : > { %v2132_v4 = vmul.f32 %v2869_v3, %v2867_v56 }
0x1626   : > { %2722 = vmatmul.msk.f32.vlgmr.msra.gmra.mxu2 %vm930_vm7, %v2132_v4 }
0x1627   : > { %2405 = vmatpush.msra.mxu2 %v2752_v33 }
0x1629   : > { %2406 = vmatpush.msra.mxu2 %v2751_v34 }
0x162b   : > { %2407 = vmatpush.msra.mxu2 %v2750_v35 }
0x162d   : > { %2408 = vmatpush.msra.mxu2 %v2749_v36 }
0x162e   : > { %2741 = vmatmul.msk.f32.vlgmr.msrb.gmra.mxu2 %vm901_vm5, %v2184_v1 }
0x16a9   : > { %v2153_v9 = vpop.f32.mrf.mxu2 }
0x16aa   : > { %2746 = vmatmul.msk.f32.vlgmr.msra.gmra.mxu1 %vm901_vm5, %v2153_v9 }
0x16b1   : > { %v2258_v40 = vpop.f32.mrf.mxu2 }
0x16b2   : > { %v2261_v11 = vsel %vm3328_vm12, -1e+09, %v2258_v40 }
0x16b3   : > { %v2262_v12 = vsel %vm930_vm7, %v2261_v11, -inf }
0x16b4   : > { %2263 = vmax.xlane.f32.xlu0 %v2262_v12 }
0x1727   : > { %v2264_v13 = vpop.xlane.xlu0 %2263  ;;  %v2342_v23 = vpop.f32.mrf.mxu1 }
0x1728   : > { %v2265_v14 = vsub.f32 %v2261_v11, %v2264_v13 }
0x172a   : > { %v2266_v15 = vmul.f32 1.442695, %v2265_v14 }
0x172c   : > { %2870 = vpow2.f32 %v2266_v15 }
0x1732   : > { %v2871_v16 = vpop.eup %2870 }
0x1733   : > { %v2268_v17 = vsel %vm930_vm7, %v2871_v16, 0.0 }
0x1734   : > { %2269 = vadd.xlane.f32.xlu1 %v2268_v17 }
0x17a7   : > { %v2270_v19 = vpop.xlane.xlu1 %2269 }
0x17a8   : > { %2872 = vrcp.f32 %v2270_v19 }
0x17ae   : > { %v2873_v10 = vpop.eup %2872 }
0x17af   : > { %v2272_v20 = vmul.f32 %v2873_v10, %v2871_v16 }
0x17b1   : > { %2742 = vmatmul.msk.f32.vlgmr.msrb.gmra.mxu3 %vm930_vm7, %v2272_v20  ;;  %v2828_v20 = vld [vmem:[%s3824_s22 + $0x1] ss:$0 sm:$0xff] }
0x1834   : > { %v2293_v22 = vpop.f32.mrf.mxu3 }
0x1835   : > { %2745 = vmatmul.msk.f32.vlgmr.msra.gmra.mxu0 %vm901_vm5, %v2293_v22  ;;  %v2829_v22 = vld [vmem:[%s3882_s30 + $0x1] ss:$0 sm:$0xff] }
0x18b2   : > { %v2319_v24 = vpop.f32.mrf.mxu0 }
0x18b3   : > { %v2343_v25 = vadd.f32 %v2342_v23, %v2319_v24 }
0x18b5   : > { %v2345_v26 = vadd.f32 %v2343_v25, %v3628_v37  ;;  %v2762_v37 = vld [vmem:[%s3822_s20 + $0x78] sm:$0xff] }
0x18b6   : > { %2439 = vmatpush.msra.mxu3 %v2762_v37 }
0x18b7   : > { %v2350_v27 = vsel %vm787_vm0, %v2345_v26, 0.0 }
0x18b8   : > { %2351 = vadd.xlane.f32.xlu2 %v2350_v27  ;;  %2440 = vmatpush.msra.mxu3 %v2761_v38 }
0x18ba   : > { %2441 = vmatpush.msra.mxu3 %v2760_v39 }
0x18bc   : > { %2442 = vmatpush.msra.mxu3 %v2759_v43 }
0x18be   : > { %2443 = vmatpush.msra.mxu3 %v2758_v45 }
0x18c0   : > { %2444 = vmatpush.msra.mxu3 %v2757_v58 }
0x18c2   : > { %2445 = vmatpush.msra.mxu3 %v2756_v59 }
0x18c4   : > { %2446 = vmatpush.msra.mxu3 %v2755_v60 }
0x192b   : > { %v2352_v28 = vpop.xlane.xlu2 %2351 }
0x192c   : > { %v2353_v29 = vmul.f32 %v2352_v28, %v3129_v8 }
0x192e   : > { %v2354_v30 = vsub.f32 %v2345_v26, %v2353_v29 }
0x1930   : > { %v2355_v31 = vmul.f32 %v2354_v30, %v2354_v30 }
0x1932   : > { %v2356_v32 = vsel %vm787_vm0, %v2355_v31, 0.0 }
0x1933   : > { %2357 = vadd.xlane.f32.xlu0 %v2356_v32 }
0x19a6   : > { %v2358_v41 = vpop.xlane.xlu0 %2357 }
0x19a7   : > { %v2359_v42 = vmul.f32 %v2358_v41, %v3129_v8 }
0x19a9   : > { %v2360_v44 = vadd.f32 1e-06, %v2359_v42 }
0x19ab   : > { %2874 = vrsqrt.f32 %v2360_v44  ;;  %vm2367_vm7 = vweird.f32 %v2360_v44 }
0x19b1   : > { %v2875_v46 = vpop.eup %2874 }
0x19b2   : > { %v2362_v47 = vmul.f32 %v2875_v46, %v2360_v44  ;;  %vm2368_vm5 = vweird.f32 %v2875_v46 }
0x19b3   : > { %vm2369_vm10 = vmor %vm2367_vm7, %vm2368_vm5 }
0x19b4   : > { %v2363_v48 = vmul.f32 %v2875_v46, %v2362_v47 }
0x19b6   : > { %v2364_v49 = vmul.f32 0.5, %v2363_v48 }
0x19b8   : > { %v2365_v50 = vsub.f32 1.5, %v2364_v49 }
0x19ba   : > { %v2366_v51 = vmul.f32 %v2875_v46, %v2365_v50 }
0x19bc   : > { %v2370_v53 = vsel %vm2369_vm10, %v2875_v46, %v2366_v51 }
0x19bd   : > { %v2371_v54 = vmul.f32 %v2370_v53, %v2354_v30 }
0x19bf   : > { %v2375_v56 = vmul.f32 %v2824_v52, %v2371_v54 }
0x19c1   : > { %v2379_v57 = vadd.f32 %v2825_v55, %v2375_v56 }
0x19c3   : > { %2754 = vmatmul.msk.f32.vlgmr.msra.gmra.mxu2 %vm787_vm0, %v2379_v57 }
0x1a46   : > { %v2410_v62 = vpop.f32.mrf.mxu2 }
0x1a47   : > { %v2411_v63 = vadd.f32 %v2826_v61, %v2410_v62 }
0x1a49   : > { %v2413_v0 = vmax.f32 %v2411_v63, 0.0 }
0x1a4b   : > { %2764 = vmatmul.msk.f32.vlgmr.msra.gmra.mxu3 %vm1595_vm1, %v2413_v0 }
0x1ace   : > { %v2448_v3 = vpop.f32.mrf.mxu3 }
0x1acf   : > { %v2449_v4 = vadd.f32 %v2827_v2, %v2448_v3 }
0x1ad1   : > { %v2451_v5 = vadd.f32 %v2449_v4, %v2379_v57 }
0x1ad3   : > { %v2456_v1 = vsel %vm787_vm0, %v2451_v5, 0.0 }
0x1ad4   : > { %2457 = vadd.xlane.f32.xlu1 %v2456_v1 }
0x1b47   : > { %v2458_v6 = vpop.xlane.xlu1 %2457 }
0x1b48   : > { %v2459_v7 = vmul.f32 %v2458_v6, %v3129_v8 }
0x1b4a   : > { %v2460_v9 = vsub.f32 %v2451_v5, %v2459_v7 }
0x1b4c   : > { %v2461_v40 = vmul.f32 %v2460_v9, %v2460_v9 }
0x1b4e   : > { %v2462_v11 = vsel %vm787_vm0, %v2461_v40, 0.0 }
0x1b4f   : > { %2463 = vadd.xlane.f32.xlu2 %v2462_v11 }
0x1bc2   : > { %v2464_v12 = vpop.xlane.xlu2 %2463 }
0x1bc3   : > { %v2465_v13 = vmul.f32 %v2464_v12, %v3129_v8 }
0x1bc5   : > { %v2466_v14 = vadd.f32 1e-06, %v2465_v13 }
0x1bc7   : > { %2876 = vrsqrt.f32 %v2466_v14  ;;  %vm2473_vm12 = vweird.f32 %v2466_v14 }
0x1bcd   : > { %v2877_v15 = vpop.eup %2876 }
0x1bce   : > { %v2468_v16 = vmul.f32 %v2877_v15, %v2466_v14  ;;  %vm2474_vm11 = vweird.f32 %v2877_v15 }
0x1bcf   : > { %vm2475_vm13 = vmor %vm2473_vm12, %vm2474_vm11 }
0x1bd0   : > { %v2469_v17 = vmul.f32 %v2877_v15, %v2468_v16 }
0x1bd2   : > { %v2470_v18 = vmul.f32 0.5, %v2469_v17 }
0x1bd4   : > { %v2471_v19 = vsub.f32 1.5, %v2470_v18 }
0x1bd6   : > { %v2472_v10 = vmul.f32 %v2877_v15, %v2471_v19 }
0x1bd8   : > { %v2476_v8 = vsel %vm2475_vm13, %v2877_v15, %v2472_v10 }
0x1bd9   : > { %v2477_v21 = vmul.f32 %v2476_v8, %v2460_v9 }
0x1bdb   : > { %v2481_v23 = vmul.f32 %v2828_v20, %v2477_v21 }
0x1bdd   : > { %v2485_v24 = vadd.f32 %v2829_v22, %v2481_v23 }
0x1bdf   : > { %2486 = vst.msk [vmem:[%s765_s3] sm:$0xff] %vm787_vm0, %v2485_v24 }
0x1be0   : > { %2905 = shalt.err (!%p2902_p3)
}
0x1be1   : > { %2771 = dma.vmem_to_hbm [thread:$0]  (%p3107_p5), %s2501_s4, 128, %s2503_s9, %s2488_s7  }
0x1be2 PF: > { %s3888_s3 = sld [smem:[#allocation8_spill]] }
0x1be3   : > { %s3889_s23 = sld [smem:[#allocation5_spill]] }
0x1be8   : > { %p2777_p4 = scmp.ge.s32.totalorder %s3888_s3, 2 }
0x1be9   : > { %s2514_s8 = sand.u32 1, %s3889_s23  }
0x1bea   : > { %p2774_p7 = pnand %p2777_p4, %p3111_p6  ;;  %s2515_s2 = scalar_lea.sflag [#allocation3], %s2514_s8 }
0x1bec   : > { %p2775_p8 = pneg %p2774_p7 }
0x1bee   : > { %2923 = dma.done.wait (%p2775_p8), %s2515_s2, 128  }
0x1bef   : > { %2925 = vsyncadd (%p2775_p8), %s2515_s2, 4294967168  ;;  %s3891_s28 = sld [smem:[#allocation10_spill]] }
0x1bf0   : > { %s3892_s5 = sld [smem:[#allocation6_spill]] }
0x1bf1   : > { %s3893_s26 = sld [smem:[#allocation7_spill]] }
0x1bf2   : > { %s3894_s27 = sld [smem:[#allocation11_spill]] }
0x1bf5   : > { %p34_p9 = scmp.ge.s32.totalorder %s3891_s28, 4  }
0x1bf7   :  { %36 = sbr.rel (!%p34_p9) target bundleno = 16 (0x10), region = 194 }
0x1bfc   :  { %2521 = vsyncpa [#allocation3], 1 }
0x1bfd   :  { %2523 = vsyncpa [#allocation3 + $0x1], 1 }

</bundles_post_ra>
